<compile_context>
chip_gen: v7x
topology: tpu7x:2x2x1
jax: 0.10.0
libtpu: 0.0.40
codegen_flags: <defaults>
</compile_context>

<pallas_src>
import jax
import jax.numpy as jnp
from jax import lax
from jax.experimental import pallas as pl
from jax.experimental.pallas import tpu as pltpu

_LN_EPS = 1e-5  # PyTorch nn.LayerNorm default


def _layer_norm(x, w, b):
    mean = jnp.mean(x, axis=-1, keepdims=True)
    xc = x - mean
    var = jnp.mean(xc * xc, axis=-1, keepdims=True)
    inv = lax.rsqrt(var + _LN_EPS)
    return xc * inv * w + b


def _gelu_tanh(x):
    # TODO(synk): PyTorch F.gelu defaults to the exact erf form; the tanh approximation
    # (difference < 1e-3) is used for guaranteed Mosaic lowering.
    c = 0.7978845608028654  # sqrt(2/pi)
    return 0.5 * x * (1.0 + jnp.tanh(c * (x + 0.044715 * x * x * x)))


def _make_encoder_layer_kernel(num_heads: int, scale: float):
    def kernel(x_ref, ln0_w_ref, ln0_b_ref, wqkv_ref, wo_ref, bo_ref,
               ln1_w_ref, ln1_b_ref, w1_ref, b1_ref, w2_ref, b2_ref,
               o_ref, attn_buf):
        f32 = jnp.float32
        bf16 = jnp.bfloat16

        x = x_ref[0].astype(f32)                                   # (S, E)
        S, E = x.shape
        H = num_heads
        D = E // H

        # ---- pre-norm (f32 VPU math) ----
        xn = _layer_norm(x, ln0_w_ref[...], ln0_b_ref[...])        # (S, E)

        # ---- fused QKV projection: one full-K (S,E)x(E,3E) bf16 MXU matmul ----
        qkv = jnp.dot(xn.astype(bf16), wqkv_ref[...],
                      preferred_element_type=f32)                  # (S, 3E) f32
        q = qkv[:, 0 * E:1 * E]
        k = qkv[:, 1 * E:2 * E]
        v = qkv[:, 2 * E:3 * E]

        # ---- per-head attention (unrolled; only the inherently small-K part) ----
        for h in range(H):
            qh = q[:, h * D:(h + 1) * D].astype(bf16)              # (S, D)
            kh = k[:, h * D:(h + 1) * D].astype(bf16)              # (S, D)
            vh = v[:, h * D:(h + 1) * D].astype(bf16)              # (S, D)

            # contraction on the last dim of both -> no explicit k.T transpose
            s = lax.dot_general(qh, kh, (((1,), (1,)), ((), ())),
                                preferred_element_type=f32) * scale  # (S, S)
            s = s - jnp.max(s, axis=-1, keepdims=True)
            p = jnp.exp(s)
            p = p * pl.reciprocal(jnp.sum(p, axis=-1, keepdims=True), approx=True)
            # TODO(synk): attn_drop is identity (eval mode).
            oh = jnp.dot(p.astype(bf16), vh, preferred_element_type=f32)  # (S, D)
            attn_buf[:, h * D:(h + 1) * D] = oh.astype(bf16)

        # ---- output projection: one full-K (S,E)x(E,E) bf16 MXU matmul + bias ----
        proj = jnp.dot(attn_buf[...], wo_ref[...],
                       preferred_element_type=f32) + bo_ref[...]
        # TODO(synk): proj_drop / drop_path are identity (eval mode).

        src = x + proj                                             # residual 1
        src = _layer_norm(src, ln1_w_ref[...], ln1_b_ref[...])     # norm1

        # ---- feed-forward MLP: (S,E)x(E,F) -> gelu -> (S,F)x(F,E) ----
        h1 = jnp.dot(src.astype(bf16), w1_ref[...],
                     preferred_element_type=f32) + b1_ref[...]
        h1 = _gelu_tanh(h1)
        h2 = jnp.dot(h1.astype(bf16), w2_ref[...],
                     preferred_element_type=f32) + b2_ref[...]
        # TODO(synk): dropout1 / dropout2 / drop_path identity (eval mode).

        o_ref[0] = (src + h2).astype(o_ref.dtype)                  # residual 2

    return kernel


def transformer_encoder_layer_forward(x, params, num_heads):
    """x: (B, S, E) f32.  params: PyTorch-layout weights (see __main__)."""
    B, S, E = x.shape
    H = num_heads
    D = E // H
    scale = float(D) ** -0.5
    FF = params["linear1_w"].shape[0]

    f32 = jnp.float32
    bf16 = jnp.bfloat16

    # --- glue: transpose weights to (in, out) layout once; bf16 for MXU operands ---
    wqkv = params["qkv_w"].T.astype(bf16)          # (E, 3E)
    wo = params["proj_w"].T.astype(bf16)           # (E, E)
    w1 = params["linear1_w"].T.astype(bf16)        # (E, FF)
    w2 = params["linear2_w"].T.astype(bf16)        # (FF, E)

    bo = params["proj_b"].reshape(1, E).astype(f32)
    b1 = params["linear1_b"].reshape(1, FF).astype(f32)
    b2 = params["linear2_b"].reshape(1, E).astype(f32)
    ln0_w = params["pre_norm_w"].reshape(1, E).astype(f32)
    ln0_b = params["pre_norm_b"].reshape(1, E).astype(f32)
    ln1_w = params["norm1_w"].reshape(1, E).astype(f32)
    ln1_b = params["norm1_b"].reshape(1, E).astype(f32)

    kernel = _make_encoder_layer_kernel(H, scale)

    def full2d(shape):
        # Weights/biases are resident: constant block index -> DMA'd once, not per step.
        return pl.BlockSpec(shape, lambda b: (0, 0))

    return pl.pallas_call(
        kernel,
        out_shape=jax.ShapeDtypeStruct((B, S, E), x.dtype),
        grid_spec=pltpu.PrefetchScalarGridSpec(
            num_scalar_prefetch=0,
            grid=(B,),
            in_specs=[
                pl.BlockSpec((1, S, E), lambda b: (b, 0, 0)),   # x
                full2d((1, E)),        # pre_norm weight
                full2d((1, E)),        # pre_norm bias
                full2d((E, 3 * E)),    # fused qkv weight (transposed)
                full2d((E, E)),        # proj weight (transposed)
                full2d((1, E)),        # proj bias
                full2d((1, E)),        # norm1 weight
                full2d((1, E)),        # norm1 bias
                full2d((E, FF)),       # linear1 weight (transposed)
                full2d((1, FF)),       # linear1 bias
                full2d((FF, E)),       # linear2 weight (transposed)
                full2d((1, E)),        # linear2 bias
            ],
            out_specs=pl.BlockSpec((1, S, E), lambda b: (b, 0, 0)),
            scratch_shapes=[pltpu.VMEM((S, E), jnp.bfloat16)],   # attention-output slab
        ),
        compiler_params=pltpu.CompilerParams(
            dimension_semantics=("parallel",),
            vmem_limit_bytes=64 * 1024 * 1024,
        ),
    )(x, ln0_w, ln0_b, wqkv, wo, bo, ln1_w, ln1_b, w1, b1, w2, b2)


def transformer_encoder_layer_reference(x, params, num_heads):
    """Pure-JAX f32 reference mirroring the PyTorch forward (eval mode)."""
    B, S, E = x.shape
    H = num_heads
    D = E // H
    scale = float(D) ** -0.5

    def ln(y, w, b):
        m = jnp.mean(y, axis=-1, keepdims=True)
        v = jnp.mean((y - m) ** 2, axis=-1, keepdims=True)
        return (y - m) / jnp.sqrt(v + _LN_EPS) * w + b

    xn = ln(x, params["pre_norm_w"], params["pre_norm_b"])
    qkv = (xn @ params["qkv_w"].T).reshape(B, S, 3, H, D).transpose(2, 0, 3, 1, 4)
    q, k, v = qkv[0], qkv[1], qkv[2]                       # (B, H, S, D)
    attn = jax.nn.softmax((q @ jnp.swapaxes(k, -2, -1)) * scale, axis=-1)
    ao = (attn @ v).transpose(0, 2, 1, 3).reshape(B, S, E)
    ao = ao @ params["proj_w"].T + params["proj_b"]

    src = x + ao
    src = ln(src, params["norm1_w"], params["norm1_b"])
    h1 = _gelu_tanh(src @ params["linear1_w"].T + params["linear1_b"])
    h2 = h1 @ params["linear2_w"].T + params["linear2_b"]
    return src + h2


if __name__ == "__main__":
    # Small shapes: dim_model=32, num_heads=8, dim_feedforward=64, seq=8, batch=2.
    B, S, E, H, FF = 2, 8, 32, 8, 64

    key = jax.random.PRNGKey(0)
    keys = jax.random.split(key, 12)
    x = jax.random.normal(keys[0], (B, S, E), dtype=jnp.float32)
    params = {
        "pre_norm_w": 1.0 + 0.1 * jax.random.normal(keys[1], (E,), jnp.float32),
        "pre_norm_b": 0.1 * jax.random.normal(keys[2], (E,), jnp.float32),
        "qkv_w": 0.05 * jax.random.normal(keys[3], (3 * E, E), jnp.float32),
        "proj_w": 0.05 * jax.random.normal(keys[4], (E, E), jnp.float32),
        "proj_b": 0.05 * jax.random.normal(keys[5], (E,), jnp.float32),
        "norm1_w": 1.0 + 0.1 * jax.random.normal(keys[6], (E,), jnp.float32),
        "norm1_b": 0.1 * jax.random.normal(keys[7], (E,), jnp.float32),
        "linear1_w": 0.05 * jax.random.normal(keys[8], (FF, E), jnp.float32),
        "linear1_b": 0.05 * jax.random.normal(keys[9], (FF,), jnp.float32),
        "linear2_w": 0.05 * jax.random.normal(keys[10], (E, FF), jnp.float32),
        "linear2_b": 0.05 * jax.random.normal(keys[11], (E,), jnp.float32),
    }

    out = transformer_encoder_layer_forward(x, params, num_heads=H)
    out = jax.block_until_ready(out)

    ref = transformer_encoder_layer_reference(x, params, num_heads=H)
    assert out.shape == (B, S, E)
    max_err = float(jnp.max(jnp.abs(out - ref)))
    assert jnp.allclose(out, ref, atol=3e-2, rtol=3e-2), f"mismatch vs reference (max_err={max_err})"

    print("KERNEL_OK")
</pallas_src>

<mosaic_0001>
module attributes {stable_mosaic.version = 11 : i64} {
  func.func @kernel(%arg0: i32, %arg1: memref<1x8x32xf32, #tpu.memory_space<vmem>>, %arg2: memref<1x32xf32, #tpu.memory_space<vmem>>, %arg3: memref<1x32xf32, #tpu.memory_space<vmem>>, %arg4: memref<32x96xbf16, #tpu.memory_space<vmem>>, %arg5: memref<32x32xbf16, #tpu.memory_space<vmem>>, %arg6: memref<1x32xf32, #tpu.memory_space<vmem>>, %arg7: memref<1x32xf32, #tpu.memory_space<vmem>>, %arg8: memref<1x32xf32, #tpu.memory_space<vmem>>, %arg9: memref<32x64xbf16, #tpu.memory_space<vmem>>, %arg10: memref<1x64xf32, #tpu.memory_space<vmem>>, %arg11: memref<64x32xbf16, #tpu.memory_space<vmem>>, %arg12: memref<1x32xf32, #tpu.memory_space<vmem>>, %arg13: memref<1x8x32xf32, #tpu.memory_space<vmem>>, %arg14: memref<8x32xbf16, #tpu.memory_space<vmem>>) attributes {dimension_semantics = [#tpu.dimension_semantics<parallel>], iteration_bounds = array<i64: 2>, scalar_prefetch = 0 : i64, scratch_operands = 1 : i64, tpu.core_type = #tpu.core_type<tc>, window_params = [{transform_indices = @transform_0, window_bounds = array<i64: 1, 8, 32>}, {pipeline_mode = #tpu.pipeline_mode<synchronous>, transform_indices = @transform_1, window_bounds = array<i64: 1, 32>}, {pipeline_mode = #tpu.pipeline_mode<synchronous>, transform_indices = @transform_2, window_bounds = array<i64: 1, 32>}, {pipeline_mode = #tpu.pipeline_mode<synchronous>, transform_indices = @transform_3, window_bounds = array<i64: 32, 96>}, {pipeline_mode = #tpu.pipeline_mode<synchronous>, transform_indices = @transform_4, window_bounds = array<i64: 32, 32>}, {pipeline_mode = #tpu.pipeline_mode<synchronous>, transform_indices = @transform_5, window_bounds = array<i64: 1, 32>}, {pipeline_mode = #tpu.pipeline_mode<synchronous>, transform_indices = @transform_6, window_bounds = array<i64: 1, 32>}, {pipeline_mode = #tpu.pipeline_mode<synchronous>, transform_indices = @transform_7, window_bounds = array<i64: 1, 32>}, {pipeline_mode = #tpu.pipeline_mode<synchronous>, transform_indices = @transform_8, window_bounds = array<i64: 32, 64>}, {pipeline_mode = #tpu.pipeline_mode<synchronous>, transform_indices = @transform_9, window_bounds = array<i64: 1, 64>}, {pipeline_mode = #tpu.pipeline_mode<synchronous>, transform_indices = @transform_10, window_bounds = array<i64: 64, 32>}, {pipeline_mode = #tpu.pipeline_mode<synchronous>, transform_indices = @transform_11, window_bounds = array<i64: 1, 32>}, {transform_indices = @transform_12, window_bounds = array<i64: 1, 8, 32>}]} {
    %c0 = arith.constant 0 : index
    %c0_0 = arith.constant 0 : index
    %c0_1 = arith.constant 0 : index
    %0 = vector.load %arg1[%c0, %c0_0, %c0_1] : memref<1x8x32xf32, #tpu.memory_space<vmem>>, vector<1x8x32xf32>
    %1 = vector.shape_cast %0 : vector<1x8x32xf32> to vector<8x32xf32>
    %c0_2 = arith.constant 0 : index
    %c0_3 = arith.constant 0 : index
    %2 = vector.load %arg2[%c0_2, %c0_3] : memref<1x32xf32, #tpu.memory_space<vmem>>, vector<1x32xf32>
    %c0_4 = arith.constant 0 : index
    %c0_5 = arith.constant 0 : index
    %3 = vector.load %arg3[%c0_4, %c0_5] : memref<1x32xf32, #tpu.memory_space<vmem>>, vector<1x32xf32>
    %cst = arith.constant dense<0.000000e+00> : vector<8xf32>
    %4 = vector.multi_reduction <add>, %1, %cst [1] : vector<8x32xf32> to vector<8xf32>
    %5 = vector.shape_cast %4 : vector<8xf32> to vector<8x1xf32>
    %cst_6 = arith.constant 3.200000e+01 : f32
    %6 = vector.broadcast %cst_6 : f32 to vector<8x1xf32>
    %7 = arith.divf %5, %6 : vector<8x1xf32>
    %8 = vector.broadcast %7 : vector<8x1xf32> to vector<8x32xf32>
    %9 = arith.subf %1, %8 : vector<8x32xf32>
    %10 = arith.mulf %9, %9 : vector<8x32xf32>
    %cst_7 = arith.constant dense<0.000000e+00> : vector<8xf32>
    %11 = vector.multi_reduction <add>, %10, %cst_7 [1] : vector<8x32xf32> to vector<8xf32>
    %12 = vector.shape_cast %11 : vector<8xf32> to vector<8x1xf32>
    %cst_8 = arith.constant 3.200000e+01 : f32
    %13 = vector.broadcast %cst_8 : f32 to vector<8x1xf32>
    %14 = arith.divf %12, %13 : vector<8x1xf32>
    %cst_9 = arith.constant 9.99999974E-6 : f32
    %15 = vector.broadcast %cst_9 : f32 to vector<8x1xf32>
    %16 = arith.addf %14, %15 : vector<8x1xf32>
    %17 = math.rsqrt %16 : vector<8x1xf32>
    %18 = vector.broadcast %17 : vector<8x1xf32> to vector<8x32xf32>
    %19 = arith.mulf %9, %18 : vector<8x32xf32>
    %20 = vector.broadcast %2 : vector<1x32xf32> to vector<8x32xf32>
    %21 = arith.mulf %19, %20 : vector<8x32xf32>
    %22 = vector.broadcast %3 : vector<1x32xf32> to vector<8x32xf32>
    %23 = arith.addf %21, %22 : vector<8x32xf32>
    %24 = arith.truncf %23 : vector<8x32xf32> to vector<8x32xbf16>
    %c0_10 = arith.constant 0 : index
    %c0_11 = arith.constant 0 : index
    %25 = vector.load %arg4[%c0_10, %c0_11] : memref<32x96xbf16, #tpu.memory_space<vmem>>, vector<32x96xbf16>
    %cst_12 = arith.constant dense<0.000000e+00> : vector<8x96xf32>
    %26 = tpu.matmul %24, %25, %cst_12 {dimension_numbers = #tpu.dot_dimension_numbers<[1], [0], [0], [1], [0, 0, 1, 1], [], []>} : vector<8x32xbf16>, vector<32x96xbf16>, vector<8x96xf32> -> vector<8x96xf32>
    %27 = vector.extract_strided_slice %26 {offsets = [0, 0], sizes = [8, 32], strides = [1, 1]} : vector<8x96xf32> to vector<8x32xf32>
    %28 = vector.extract_strided_slice %26 {offsets = [0, 32], sizes = [8, 32], strides = [1, 1]} : vector<8x96xf32> to vector<8x32xf32>
    %29 = vector.extract_strided_slice %26 {offsets = [0, 64], sizes = [8, 32], strides = [1, 1]} : vector<8x96xf32> to vector<8x32xf32>
    %30 = vector.extract_strided_slice %27 {offsets = [0, 0], sizes = [8, 4], strides = [1, 1]} : vector<8x32xf32> to vector<8x4xf32>
    %31 = arith.truncf %30 : vector<8x4xf32> to vector<8x4xbf16>
    %32 = vector.extract_strided_slice %28 {offsets = [0, 0], sizes = [8, 4], strides = [1, 1]} : vector<8x32xf32> to vector<8x4xf32>
    %33 = arith.truncf %32 : vector<8x4xf32> to vector<8x4xbf16>
    %34 = vector.extract_strided_slice %29 {offsets = [0, 0], sizes = [8, 4], strides = [1, 1]} : vector<8x32xf32> to vector<8x4xf32>
    %35 = arith.truncf %34 : vector<8x4xf32> to vector<8x4xbf16>
    %cst_13 = arith.constant dense<0.000000e+00> : vector<8x8xf32>
    %36 = tpu.matmul %31, %33, %cst_13 {dimension_numbers = #tpu.dot_dimension_numbers<[1], [1], [0], [0], [0, 0, 1, 0], [], []>} : vector<8x4xbf16>, vector<8x4xbf16>, vector<8x8xf32> -> vector<8x8xf32>
    %cst_14 = arith.constant 5.000000e-01 : f32
    %37 = vector.broadcast %cst_14 : f32 to vector<8x8xf32>
    %38 = arith.mulf %36, %37 : vector<8x8xf32>
    %cst_15 = arith.constant dense<0xFF800000> : vector<8xf32>
    %39 = vector.multi_reduction <maximumf>, %38, %cst_15 [1] : vector<8x8xf32> to vector<8xf32>
    %40 = vector.shape_cast %39 : vector<8xf32> to vector<8x1xf32>
    %41 = vector.broadcast %40 : vector<8x1xf32> to vector<8x8xf32>
    %42 = arith.subf %38, %41 : vector<8x8xf32>
    %43 = math.exp %42 : vector<8x8xf32>
    %cst_16 = arith.constant dense<0.000000e+00> : vector<8xf32>
    %44 = vector.multi_reduction <add>, %43, %cst_16 [1] : vector<8x8xf32> to vector<8xf32>
    %45 = vector.shape_cast %44 : vector<8xf32> to vector<8x1xf32>
    %46 = tpu.reciprocal %45 {approx = true} : vector<8x1xf32> -> vector<8x1xf32>
    %47 = vector.broadcast %46 : vector<8x1xf32> to vector<8x8xf32>
    %48 = arith.mulf %43, %47 : vector<8x8xf32>
    %49 = arith.truncf %48 : vector<8x8xf32> to vector<8x8xbf16>
    %cst_17 = arith.constant dense<0.000000e+00> : vector<8x4xf32>
    %50 = tpu.matmul %49, %35, %cst_17 {dimension_numbers = #tpu.dot_dimension_numbers<[1], [0], [0], [1], [0, 0, 1, 1], [], []>} : vector<8x8xbf16>, vector<8x4xbf16>, vector<8x4xf32> -> vector<8x4xf32>
    %51 = arith.truncf %50 : vector<8x4xf32> to vector<8x4xbf16>
    %c0_18 = arith.constant 0 : index
    %c0_19 = arith.constant 0 : index
    %52 = vector.load %arg14[%c0_18, %c0_19] : memref<8x32xbf16, #tpu.memory_space<vmem>>, vector<8x4xbf16>
    tpu.vector_store %arg14[%c0_18, %c0_19], %51 {strides = array<i32>} : memref<8x32xbf16, #tpu.memory_space<vmem>>, vector<8x4xbf16>,
    %53 = vector.extract_strided_slice %27 {offsets = [0, 4], sizes = [8, 4], strides = [1, 1]} : vector<8x32xf32> to vector<8x4xf32>
    %54 = arith.truncf %53 : vector<8x4xf32> to vector<8x4xbf16>
    %55 = vector.extract_strided_slice %28 {offsets = [0, 4], sizes = [8, 4], strides = [1, 1]} : vector<8x32xf32> to vector<8x4xf32>
    %56 = arith.truncf %55 : vector<8x4xf32> to vector<8x4xbf16>
    %57 = vector.extract_strided_slice %29 {offsets = [0, 4], sizes = [8, 4], strides = [1, 1]} : vector<8x32xf32> to vector<8x4xf32>
    %58 = arith.truncf %57 : vector<8x4xf32> to vector<8x4xbf16>
    %cst_20 = arith.constant dense<0.000000e+00> : vector<8x8xf32>
    %59 = tpu.matmul %54, %56, %cst_20 {dimension_numbers = #tpu.dot_dimension_numbers<[1], [1], [0], [0], [0, 0, 1, 0], [], []>} : vector<8x4xbf16>, vector<8x4xbf16>, vector<8x8xf32> -> vector<8x8xf32>
    %cst_21 = arith.constant 5.000000e-01 : f32
    %60 = vector.broadcast %cst_21 : f32 to vector<8x8xf32>
    %61 = arith.mulf %59, %60 : vector<8x8xf32>
    %cst_22 = arith.constant dense<0xFF800000> : vector<8xf32>
    %62 = vector.multi_reduction <maximumf>, %61, %cst_22 [1] : vector<8x8xf32> to vector<8xf32>
    %63 = vector.shape_cast %62 : vector<8xf32> to vector<8x1xf32>
    %64 = vector.broadcast %63 : vector<8x1xf32> to vector<8x8xf32>
    %65 = arith.subf %61, %64 : vector<8x8xf32>
    %66 = math.exp %65 : vector<8x8xf32>
    %cst_23 = arith.constant dense<0.000000e+00> : vector<8xf32>
    %67 = vector.multi_reduction <add>, %66, %cst_23 [1] : vector<8x8xf32> to vector<8xf32>
    %68 = vector.shape_cast %67 : vector<8xf32> to vector<8x1xf32>
    %69 = tpu.reciprocal %68 {approx = true} : vector<8x1xf32> -> vector<8x1xf32>
    %70 = vector.broadcast %69 : vector<8x1xf32> to vector<8x8xf32>
    %71 = arith.mulf %66, %70 : vector<8x8xf32>
    %72 = arith.truncf %71 : vector<8x8xf32> to vector<8x8xbf16>
    %cst_24 = arith.constant dense<0.000000e+00> : vector<8x4xf32>
    %73 = tpu.matmul %72, %58, %cst_24 {dimension_numbers = #tpu.dot_dimension_numbers<[1], [0], [0], [1], [0, 0, 1, 1], [], []>} : vector<8x8xbf16>, vector<8x4xbf16>, vector<8x4xf32> -> vector<8x4xf32>
    %74 = arith.truncf %73 : vector<8x4xf32> to vector<8x4xbf16>
    %c0_25 = arith.constant 0 : index
    %c4 = arith.constant 4 : index
    %75 = vector.load %arg14[%c0_25, %c4] : memref<8x32xbf16, #tpu.memory_space<vmem>>, vector<8x4xbf16>
    tpu.vector_store %arg14[%c0_25, %c4], %74 {strides = array<i32>} : memref<8x32xbf16, #tpu.memory_space<vmem>>, vector<8x4xbf16>,
    %76 = vector.extract_strided_slice %27 {offsets = [0, 8], sizes = [8, 4], strides = [1, 1]} : vector<8x32xf32> to vector<8x4xf32>
    %77 = arith.truncf %76 : vector<8x4xf32> to vector<8x4xbf16>
    %78 = vector.extract_strided_slice %28 {offsets = [0, 8], sizes = [8, 4], strides = [1, 1]} : vector<8x32xf32> to vector<8x4xf32>
    %79 = arith.truncf %78 : vector<8x4xf32> to vector<8x4xbf16>
    %80 = vector.extract_strided_slice %29 {offsets = [0, 8], sizes = [8, 4], strides = [1, 1]} : vector<8x32xf32> to vector<8x4xf32>
    %81 = arith.truncf %80 : vector<8x4xf32> to vector<8x4xbf16>
    %cst_26 = arith.constant dense<0.000000e+00> : vector<8x8xf32>
    %82 = tpu.matmul %77, %79, %cst_26 {dimension_numbers = #tpu.dot_dimension_numbers<[1], [1], [0], [0], [0, 0, 1, 0], [], []>} : vector<8x4xbf16>, vector<8x4xbf16>, vector<8x8xf32> -> vector<8x8xf32>
    %cst_27 = arith.constant 5.000000e-01 : f32
    %83 = vector.broadcast %cst_27 : f32 to vector<8x8xf32>
    %84 = arith.mulf %82, %83 : vector<8x8xf32>
    %cst_28 = arith.constant dense<0xFF800000> : vector<8xf32>
    %85 = vector.multi_reduction <maximumf>, %84, %cst_28 [1] : vector<8x8xf32> to vector<8xf32>
    %86 = vector.shape_cast %85 : vector<8xf32> to vector<8x1xf32>
    %87 = vector.broadcast %86 : vector<8x1xf32> to vector<8x8xf32>
    %88 = arith.subf %84, %87 : vector<8x8xf32>
    %89 = math.exp %88 : vector<8x8xf32>
    %cst_29 = arith.constant dense<0.000000e+00> : vector<8xf32>
    %90 = vector.multi_reduction <add>, %89, %cst_29 [1] : vector<8x8xf32> to vector<8xf32>
    %91 = vector.shape_cast %90 : vector<8xf32> to vector<8x1xf32>
    %92 = tpu.reciprocal %91 {approx = true} : vector<8x1xf32> -> vector<8x1xf32>
    %93 = vector.broadcast %92 : vector<8x1xf32> to vector<8x8xf32>
    %94 = arith.mulf %89, %93 : vector<8x8xf32>
    %95 = arith.truncf %94 : vector<8x8xf32> to vector<8x8xbf16>
    %cst_30 = arith.constant dense<0.000000e+00> : vector<8x4xf32>
    %96 = tpu.matmul %95, %81, %cst_30 {dimension_numbers = #tpu.dot_dimension_numbers<[1], [0], [0], [1], [0, 0, 1, 1], [], []>} : vector<8x8xbf16>, vector<8x4xbf16>, vector<8x4xf32> -> vector<8x4xf32>
    %97 = arith.truncf %96 : vector<8x4xf32> to vector<8x4xbf16>
    %c0_31 = arith.constant 0 : index
    %c8 = arith.constant 8 : index
    %98 = vector.load %arg14[%c0_31, %c8] : memref<8x32xbf16, #tpu.memory_space<vmem>>, vector<8x4xbf16>
    tpu.vector_store %arg14[%c0_31, %c8], %97 {strides = array<i32>} : memref<8x32xbf16, #tpu.memory_space<vmem>>, vector<8x4xbf16>,
    %99 = vector.extract_strided_slice %27 {offsets = [0, 12], sizes = [8, 4], strides = [1, 1]} : vector<8x32xf32> to vector<8x4xf32>
    %100 = arith.truncf %99 : vector<8x4xf32> to vector<8x4xbf16>
    %101 = vector.extract_strided_slice %28 {offsets = [0, 12], sizes = [8, 4], strides = [1, 1]} : vector<8x32xf32> to vector<8x4xf32>
    %102 = arith.truncf %101 : vector<8x4xf32> to vector<8x4xbf16>
    %103 = vector.extract_strided_slice %29 {offsets = [0, 12], sizes = [8, 4], strides = [1, 1]} : vector<8x32xf32> to vector<8x4xf32>
    %104 = arith.truncf %103 : vector<8x4xf32> to vector<8x4xbf16>
    %cst_32 = arith.constant dense<0.000000e+00> : vector<8x8xf32>
    %105 = tpu.matmul %100, %102, %cst_32 {dimension_numbers = #tpu.dot_dimension_numbers<[1], [1], [0], [0], [0, 0, 1, 0], [], []>} : vector<8x4xbf16>, vector<8x4xbf16>, vector<8x8xf32> -> vector<8x8xf32>
    %cst_33 = arith.constant 5.000000e-01 : f32
    %106 = vector.broadcast %cst_33 : f32 to vector<8x8xf32>
    %107 = arith.mulf %105, %106 : vector<8x8xf32>
    %cst_34 = arith.constant dense<0xFF800000> : vector<8xf32>
    %108 = vector.multi_reduction <maximumf>, %107, %cst_34 [1] : vector<8x8xf32> to vector<8xf32>
    %109 = vector.shape_cast %108 : vector<8xf32> to vector<8x1xf32>
    %110 = vector.broadcast %109 : vector<8x1xf32> to vector<8x8xf32>
    %111 = arith.subf %107, %110 : vector<8x8xf32>
    %112 = math.exp %111 : vector<8x8xf32>
    %cst_35 = arith.constant dense<0.000000e+00> : vector<8xf32>
    %113 = vector.multi_reduction <add>, %112, %cst_35 [1] : vector<8x8xf32> to vector<8xf32>
    %114 = vector.shape_cast %113 : vector<8xf32> to vector<8x1xf32>
    %115 = tpu.reciprocal %114 {approx = true} : vector<8x1xf32> -> vector<8x1xf32>
    %116 = vector.broadcast %115 : vector<8x1xf32> to vector<8x8xf32>
    %117 = arith.mulf %112, %116 : vector<8x8xf32>
    %118 = arith.truncf %117 : vector<8x8xf32> to vector<8x8xbf16>
    %cst_36 = arith.constant dense<0.000000e+00> : vector<8x4xf32>
    %119 = tpu.matmul %118, %104, %cst_36 {dimension_numbers = #tpu.dot_dimension_numbers<[1], [0], [0], [1], [0, 0, 1, 1], [], []>} : vector<8x8xbf16>, vector<8x4xbf16>, vector<8x4xf32> -> vector<8x4xf32>
    %120 = arith.truncf %119 : vector<8x4xf32> to vector<8x4xbf16>
    %c0_37 = arith.constant 0 : index
    %c12 = arith.constant 12 : index
    %121 = vector.load %arg14[%c0_37, %c12] : memref<8x32xbf16, #tpu.memory_space<vmem>>, vector<8x4xbf16>
    tpu.vector_store %arg14[%c0_37, %c12], %120 {strides = array<i32>} : memref<8x32xbf16, #tpu.memory_space<vmem>>, vector<8x4xbf16>,
    %122 = vector.extract_strided_slice %27 {offsets = [0, 16], sizes = [8, 4], strides = [1, 1]} : vector<8x32xf32> to vector<8x4xf32>
    %123 = arith.truncf %122 : vector<8x4xf32> to vector<8x4xbf16>
    %124 = vector.extract_strided_slice %28 {offsets = [0, 16], sizes = [8, 4], strides = [1, 1]} : vector<8x32xf32> to vector<8x4xf32>
    %125 = arith.truncf %124 : vector<8x4xf32> to vector<8x4xbf16>
    %126 = vector.extract_strided_slice %29 {offsets = [0, 16], sizes = [8, 4], strides = [1, 1]} : vector<8x32xf32> to vector<8x4xf32>
    %127 = arith.truncf %126 : vector<8x4xf32> to vector<8x4xbf16>
    %cst_38 = arith.constant dense<0.000000e+00> : vector<8x8xf32>
    %128 = tpu.matmul %123, %125, %cst_38 {dimension_numbers = #tpu.dot_dimension_numbers<[1], [1], [0], [0], [0, 0, 1, 0], [], []>} : vector<8x4xbf16>, vector<8x4xbf16>, vector<8x8xf32> -> vector<8x8xf32>
    %cst_39 = arith.constant 5.000000e-01 : f32
    %129 = vector.broadcast %cst_39 : f32 to vector<8x8xf32>
    %130 = arith.mulf %128, %129 : vector<8x8xf32>
    %cst_40 = arith.constant dense<0xFF800000> : vector<8xf32>
    %131 = vector.multi_reduction <maximumf>, %130, %cst_40 [1] : vector<8x8xf32> to vector<8xf32>
    %132 = vector.shape_cast %131 : vector<8xf32> to vector<8x1xf32>
    %133 = vector.broadcast %132 : vector<8x1xf32> to vector<8x8xf32>
    %134 = arith.subf %130, %133 : vector<8x8xf32>
    %135 = math.exp %134 : vector<8x8xf32>
    %cst_41 = arith.constant dense<0.000000e+00> : vector<8xf32>
    %136 = vector.multi_reduction <add>, %135, %cst_41 [1] : vector<8x8xf32> to vector<8xf32>
    %137 = vector.shape_cast %136 : vector<8xf32> to vector<8x1xf32>
    %138 = tpu.reciprocal %137 {approx = true} : vector<8x1xf32> -> vector<8x1xf32>
    %139 = vector.broadcast %138 : vector<8x1xf32> to vector<8x8xf32>
    %140 = arith.mulf %135, %139 : vector<8x8xf32>
    %141 = arith.truncf %140 : vector<8x8xf32> to vector<8x8xbf16>
    %cst_42 = arith.constant dense<0.000000e+00> : vector<8x4xf32>
    %142 = tpu.matmul %141, %127, %cst_42 {dimension_numbers = #tpu.dot_dimension_numbers<[1], [0], [0], [1], [0, 0, 1, 1], [], []>} : vector<8x8xbf16>, vector<8x4xbf16>, vector<8x4xf32> -> vector<8x4xf32>
    %143 = arith.truncf %142 : vector<8x4xf32> to vector<8x4xbf16>
    %c0_43 = arith.constant 0 : index
    %c16 = arith.constant 16 : index
    %144 = vector.load %arg14[%c0_43, %c16] : memref<8x32xbf16, #tpu.memory_space<vmem>>, vector<8x4xbf16>
    tpu.vector_store %arg14[%c0_43, %c16], %143 {strides = array<i32>} : memref<8x32xbf16, #tpu.memory_space<vmem>>, vector<8x4xbf16>,
    %145 = vector.extract_strided_slice %27 {offsets = [0, 20], sizes = [8, 4], strides = [1, 1]} : vector<8x32xf32> to vector<8x4xf32>
    %146 = arith.truncf %145 : vector<8x4xf32> to vector<8x4xbf16>
    %147 = vector.extract_strided_slice %28 {offsets = [0, 20], sizes = [8, 4], strides = [1, 1]} : vector<8x32xf32> to vector<8x4xf32>
    %148 = arith.truncf %147 : vector<8x4xf32> to vector<8x4xbf16>
    %149 = vector.extract_strided_slice %29 {offsets = [0, 20], sizes = [8, 4], strides = [1, 1]} : vector<8x32xf32> to vector<8x4xf32>
    %150 = arith.truncf %149 : vector<8x4xf32> to vector<8x4xbf16>
    %cst_44 = arith.constant dense<0.000000e+00> : vector<8x8xf32>
    %151 = tpu.matmul %146, %148, %cst_44 {dimension_numbers = #tpu.dot_dimension_numbers<[1], [1], [0], [0], [0, 0, 1, 0], [], []>} : vector<8x4xbf16>, vector<8x4xbf16>, vector<8x8xf32> -> vector<8x8xf32>
    %cst_45 = arith.constant 5.000000e-01 : f32
    %152 = vector.broadcast %cst_45 : f32 to vector<8x8xf32>
    %153 = arith.mulf %151, %152 : vector<8x8xf32>
    %cst_46 = arith.constant dense<0xFF800000> : vector<8xf32>
    %154 = vector.multi_reduction <maximumf>, %153, %cst_46 [1] : vector<8x8xf32> to vector<8xf32>
    %155 = vector.shape_cast %154 : vector<8xf32> to vector<8x1xf32>
    %156 = vector.broadcast %155 : vector<8x1xf32> to vector<8x8xf32>
    %157 = arith.subf %153, %156 : vector<8x8xf32>
    %158 = math.exp %157 : vector<8x8xf32>
    %cst_47 = arith.constant dense<0.000000e+00> : vector<8xf32>
    %159 = vector.multi_reduction <add>, %158, %cst_47 [1] : vector<8x8xf32> to vector<8xf32>
    %160 = vector.shape_cast %159 : vector<8xf32> to vector<8x1xf32>
    %161 = tpu.reciprocal %160 {approx = true} : vector<8x1xf32> -> vector<8x1xf32>
    %162 = vector.broadcast %161 : vector<8x1xf32> to vector<8x8xf32>
    %163 = arith.mulf %158, %162 : vector<8x8xf32>
    %164 = arith.truncf %163 : vector<8x8xf32> to vector<8x8xbf16>
    %cst_48 = arith.constant dense<0.000000e+00> : vector<8x4xf32>
    %165 = tpu.matmul %164, %150, %cst_48 {dimension_numbers = #tpu.dot_dimension_numbers<[1], [0], [0], [1], [0, 0, 1, 1], [], []>} : vector<8x8xbf16>, vector<8x4xbf16>, vector<8x4xf32> -> vector<8x4xf32>
    %166 = arith.truncf %165 : vector<8x4xf32> to vector<8x4xbf16>
    %c0_49 = arith.constant 0 : index
    %c20 = arith.constant 20 : index
    %167 = vector.load %arg14[%c0_49, %c20] : memref<8x32xbf16, #tpu.memory_space<vmem>>, vector<8x4xbf16>
    tpu.vector_store %arg14[%c0_49, %c20], %166 {strides = array<i32>} : memref<8x32xbf16, #tpu.memory_space<vmem>>, vector<8x4xbf16>,
    %168 = vector.extract_strided_slice %27 {offsets = [0, 24], sizes = [8, 4], strides = [1, 1]} : vector<8x32xf32> to vector<8x4xf32>
    %169 = arith.truncf %168 : vector<8x4xf32> to vector<8x4xbf16>
    %170 = vector.extract_strided_slice %28 {offsets = [0, 24], sizes = [8, 4], strides = [1, 1]} : vector<8x32xf32> to vector<8x4xf32>
    %171 = arith.truncf %170 : vector<8x4xf32> to vector<8x4xbf16>
    %172 = vector.extract_strided_slice %29 {offsets = [0, 24], sizes = [8, 4], strides = [1, 1]} : vector<8x32xf32> to vector<8x4xf32>
    %173 = arith.truncf %172 : vector<8x4xf32> to vector<8x4xbf16>
    %cst_50 = arith.constant dense<0.000000e+00> : vector<8x8xf32>
    %174 = tpu.matmul %169, %171, %cst_50 {dimension_numbers = #tpu.dot_dimension_numbers<[1], [1], [0], [0], [0, 0, 1, 0], [], []>} : vector<8x4xbf16>, vector<8x4xbf16>, vector<8x8xf32> -> vector<8x8xf32>
    %cst_51 = arith.constant 5.000000e-01 : f32
    %175 = vector.broadcast %cst_51 : f32 to vector<8x8xf32>
    %176 = arith.mulf %174, %175 : vector<8x8xf32>
    %cst_52 = arith.constant dense<0xFF800000> : vector<8xf32>
    %177 = vector.multi_reduction <maximumf>, %176, %cst_52 [1] : vector<8x8xf32> to vector<8xf32>
    %178 = vector.shape_cast %177 : vector<8xf32> to vector<8x1xf32>
    %179 = vector.broadcast %178 : vector<8x1xf32> to vector<8x8xf32>
    %180 = arith.subf %176, %179 : vector<8x8xf32>
    %181 = math.exp %180 : vector<8x8xf32>
    %cst_53 = arith.constant dense<0.000000e+00> : vector<8xf32>
    %182 = vector.multi_reduction <add>, %181, %cst_53 [1] : vector<8x8xf32> to vector<8xf32>
    %183 = vector.shape_cast %182 : vector<8xf32> to vector<8x1xf32>
    %184 = tpu.reciprocal %183 {approx = true} : vector<8x1xf32> -> vector<8x1xf32>
    %185 = vector.broadcast %184 : vector<8x1xf32> to vector<8x8xf32>
    %186 = arith.mulf %181, %185 : vector<8x8xf32>
    %187 = arith.truncf %186 : vector<8x8xf32> to vector<8x8xbf16>
    %cst_54 = arith.constant dense<0.000000e+00> : vector<8x4xf32>
    %188 = tpu.matmul %187, %173, %cst_54 {dimension_numbers = #tpu.dot_dimension_numbers<[1], [0], [0], [1], [0, 0, 1, 1], [], []>} : vector<8x8xbf16>, vector<8x4xbf16>, vector<8x4xf32> -> vector<8x4xf32>
    %189 = arith.truncf %188 : vector<8x4xf32> to vector<8x4xbf16>
    %c0_55 = arith.constant 0 : index
    %c24 = arith.constant 24 : index
    %190 = vector.load %arg14[%c0_55, %c24] : memref<8x32xbf16, #tpu.memory_space<vmem>>, vector<8x4xbf16>
    tpu.vector_store %arg14[%c0_55, %c24], %189 {strides = array<i32>} : memref<8x32xbf16, #tpu.memory_space<vmem>>, vector<8x4xbf16>,
    %191 = vector.extract_strided_slice %27 {offsets = [0, 28], sizes = [8, 4], strides = [1, 1]} : vector<8x32xf32> to vector<8x4xf32>
    %192 = arith.truncf %191 : vector<8x4xf32> to vector<8x4xbf16>
    %193 = vector.extract_strided_slice %28 {offsets = [0, 28], sizes = [8, 4], strides = [1, 1]} : vector<8x32xf32> to vector<8x4xf32>
    %194 = arith.truncf %193 : vector<8x4xf32> to vector<8x4xbf16>
    %195 = vector.extract_strided_slice %29 {offsets = [0, 28], sizes = [8, 4], strides = [1, 1]} : vector<8x32xf32> to vector<8x4xf32>
    %196 = arith.truncf %195 : vector<8x4xf32> to vector<8x4xbf16>
    %cst_56 = arith.constant dense<0.000000e+00> : vector<8x8xf32>
    %197 = tpu.matmul %192, %194, %cst_56 {dimension_numbers = #tpu.dot_dimension_numbers<[1], [1], [0], [0], [0, 0, 1, 0], [], []>} : vector<8x4xbf16>, vector<8x4xbf16>, vector<8x8xf32> -> vector<8x8xf32>
    %cst_57 = arith.constant 5.000000e-01 : f32
    %198 = vector.broadcast %cst_57 : f32 to vector<8x8xf32>
    %199 = arith.mulf %197, %198 : vector<8x8xf32>
    %cst_58 = arith.constant dense<0xFF800000> : vector<8xf32>
    %200 = vector.multi_reduction <maximumf>, %199, %cst_58 [1] : vector<8x8xf32> to vector<8xf32>
    %201 = vector.shape_cast %200 : vector<8xf32> to vector<8x1xf32>
    %202 = vector.broadcast %201 : vector<8x1xf32> to vector<8x8xf32>
    %203 = arith.subf %199, %202 : vector<8x8xf32>
    %204 = math.exp %203 : vector<8x8xf32>
    %cst_59 = arith.constant dense<0.000000e+00> : vector<8xf32>
    %205 = vector.multi_reduction <add>, %204, %cst_59 [1] : vector<8x8xf32> to vector<8xf32>
    %206 = vector.shape_cast %205 : vector<8xf32> to vector<8x1xf32>
    %207 = tpu.reciprocal %206 {approx = true} : vector<8x1xf32> -> vector<8x1xf32>
    %208 = vector.broadcast %207 : vector<8x1xf32> to vector<8x8xf32>
    %209 = arith.mulf %204, %208 : vector<8x8xf32>
    %210 = arith.truncf %209 : vector<8x8xf32> to vector<8x8xbf16>
    %cst_60 = arith.constant dense<0.000000e+00> : vector<8x4xf32>
    %211 = tpu.matmul %210, %196, %cst_60 {dimension_numbers = #tpu.dot_dimension_numbers<[1], [0], [0], [1], [0, 0, 1, 1], [], []>} : vector<8x8xbf16>, vector<8x4xbf16>, vector<8x4xf32> -> vector<8x4xf32>
    %212 = arith.truncf %211 : vector<8x4xf32> to vector<8x4xbf16>
    %c0_61 = arith.constant 0 : index
    %c28 = arith.constant 28 : index
    %213 = vector.load %arg14[%c0_61, %c28] : memref<8x32xbf16, #tpu.memory_space<vmem>>, vector<8x4xbf16>
    tpu.vector_store %arg14[%c0_61, %c28], %212 {strides = array<i32>} : memref<8x32xbf16, #tpu.memory_space<vmem>>, vector<8x4xbf16>,
    %c0_62 = arith.constant 0 : index
    %c0_63 = arith.constant 0 : index
    %214 = vector.load %arg14[%c0_62, %c0_63] : memref<8x32xbf16, #tpu.memory_space<vmem>>, vector<8x32xbf16>
    %c0_64 = arith.constant 0 : index
    %c0_65 = arith.constant 0 : index
    %215 = vector.load %arg5[%c0_64, %c0_65] : memref<32x32xbf16, #tpu.memory_space<vmem>>, vector<32x32xbf16>
    %cst_66 = arith.constant dense<0.000000e+00> : vector<8x32xf32>
    %216 = tpu.matmul %214, %215, %cst_66 {dimension_numbers = #tpu.dot_dimension_numbers<[1], [0], [0], [1], [0, 0, 1, 1], [], []>} : vector<8x32xbf16>, vector<32x32xbf16>, vector<8x32xf32> -> vector<8x32xf32>
    %c0_67 = arith.constant 0 : index
    %c0_68 = arith.constant 0 : index
    %217 = vector.load %arg6[%c0_67, %c0_68] : memref<1x32xf32, #tpu.memory_space<vmem>>, vector<1x32xf32>
    %218 = vector.broadcast %217 : vector<1x32xf32> to vector<8x32xf32>
    %219 = arith.addf %216, %218 : vector<8x32xf32>
    %220 = arith.addf %1, %219 : vector<8x32xf32>
    %c0_69 = arith.constant 0 : index
    %c0_70 = arith.constant 0 : index
    %221 = vector.load %arg7[%c0_69, %c0_70] : memref<1x32xf32, #tpu.memory_space<vmem>>, vector<1x32xf32>
    %c0_71 = arith.constant 0 : index
    %c0_72 = arith.constant 0 : index
    %222 = vector.load %arg8[%c0_71, %c0_72] : memref<1x32xf32, #tpu.memory_space<vmem>>, vector<1x32xf32>
    %cst_73 = arith.constant dense<0.000000e+00> : vector<8xf32>
    %223 = vector.multi_reduction <add>, %220, %cst_73 [1] : vector<8x32xf32> to vector<8xf32>
    %224 = vector.shape_cast %223 : vector<8xf32> to vector<8x1xf32>
    %cst_74 = arith.constant 3.200000e+01 : f32
    %225 = vector.broadcast %cst_74 : f32 to vector<8x1xf32>
    %226 = arith.divf %224, %225 : vector<8x1xf32>
    %227 = vector.broadcast %226 : vector<8x1xf32> to vector<8x32xf32>
    %228 = arith.subf %220, %227 : vector<8x32xf32>
    %229 = arith.mulf %228, %228 : vector<8x32xf32>
    %cst_75 = arith.constant dense<0.000000e+00> : vector<8xf32>
    %230 = vector.multi_reduction <add>, %229, %cst_75 [1] : vector<8x32xf32> to vector<8xf32>
    %231 = vector.shape_cast %230 : vector<8xf32> to vector<8x1xf32>
    %cst_76 = arith.constant 3.200000e+01 : f32
    %232 = vector.broadcast %cst_76 : f32 to vector<8x1xf32>
    %233 = arith.divf %231, %232 : vector<8x1xf32>
    %cst_77 = arith.constant 9.99999974E-6 : f32
    %234 = vector.broadcast %cst_77 : f32 to vector<8x1xf32>
    %235 = arith.addf %233, %234 : vector<8x1xf32>
    %236 = math.rsqrt %235 : vector<8x1xf32>
    %237 = vector.broadcast %236 : vector<8x1xf32> to vector<8x32xf32>
    %238 = arith.mulf %228, %237 : vector<8x32xf32>
    %239 = vector.broadcast %221 : vector<1x32xf32> to vector<8x32xf32>
    %240 = arith.mulf %238, %239 : vector<8x32xf32>
    %241 = vector.broadcast %222 : vector<1x32xf32> to vector<8x32xf32>
    %242 = arith.addf %240, %241 : vector<8x32xf32>
    %243 = arith.truncf %242 : vector<8x32xf32> to vector<8x32xbf16>
    %c0_78 = arith.constant 0 : index
    %c0_79 = arith.constant 0 : index
    %244 = vector.load %arg9[%c0_78, %c0_79] : memref<32x64xbf16, #tpu.memory_space<vmem>>, vector<32x64xbf16>
    %cst_80 = arith.constant dense<0.000000e+00> : vector<8x64xf32>
    %245 = tpu.matmul %243, %244, %cst_80 {dimension_numbers = #tpu.dot_dimension_numbers<[1], [0], [0], [1], [0, 0, 1, 1], [], []>} : vector<8x32xbf16>, vector<32x64xbf16>, vector<8x64xf32> -> vector<8x64xf32>
    %c0_81 = arith.constant 0 : index
    %c0_82 = arith.constant 0 : index
    %246 = vector.load %arg10[%c0_81, %c0_82] : memref<1x64xf32, #tpu.memory_space<vmem>>, vector<1x64xf32>
    %247 = vector.broadcast %246 : vector<1x64xf32> to vector<8x64xf32>
    %248 = arith.addf %245, %247 : vector<8x64xf32>
    %cst_83 = arith.constant 5.000000e-01 : f32
    %249 = vector.broadcast %cst_83 : f32 to vector<8x64xf32>
    %250 = arith.mulf %249, %248 : vector<8x64xf32>
    %cst_84 = arith.constant 4.471500e-02 : f32
    %251 = vector.broadcast %cst_84 : f32 to vector<8x64xf32>
    %252 = arith.mulf %251, %248 : vector<8x64xf32>
    %253 = arith.mulf %252, %248 : vector<8x64xf32>
    %254 = arith.mulf %253, %248 : vector<8x64xf32>
    %255 = arith.addf %248, %254 : vector<8x64xf32>
    %cst_85 = arith.constant 0.797884583 : f32
    %256 = vector.broadcast %cst_85 : f32 to vector<8x64xf32>
    %257 = arith.mulf %256, %255 : vector<8x64xf32>
    %258 = math.tanh %257 : vector<8x64xf32>
    %cst_86 = arith.constant 1.000000e+00 : f32
    %259 = vector.broadcast %cst_86 : f32 to vector<8x64xf32>
    %260 = arith.addf %259, %258 : vector<8x64xf32>
    %261 = arith.mulf %250, %260 : vector<8x64xf32>
    %262 = arith.truncf %261 : vector<8x64xf32> to vector<8x64xbf16>
    %c0_87 = arith.constant 0 : index
    %c0_88 = arith.constant 0 : index
    %263 = vector.load %arg11[%c0_87, %c0_88] : memref<64x32xbf16, #tpu.memory_space<vmem>>, vector<64x32xbf16>
    %cst_89 = arith.constant dense<0.000000e+00> : vector<8x32xf32>
    %264 = tpu.matmul %262, %263, %cst_89 {dimension_numbers = #tpu.dot_dimension_numbers<[1], [0], [0], [1], [0, 0, 1, 1], [], []>} : vector<8x64xbf16>, vector<64x32xbf16>, vector<8x32xf32> -> vector<8x32xf32>
    %c0_90 = arith.constant 0 : index
    %c0_91 = arith.constant 0 : index
    %265 = vector.load %arg12[%c0_90, %c0_91] : memref<1x32xf32, #tpu.memory_space<vmem>>, vector<1x32xf32>
    %266 = vector.broadcast %265 : vector<1x32xf32> to vector<8x32xf32>
    %267 = arith.addf %264, %266 : vector<8x32xf32>
    %268 = arith.addf %242, %267 : vector<8x32xf32>
    %c0_92 = arith.constant 0 : index
    %c0_93 = arith.constant 0 : index
    %c0_94 = arith.constant 0 : index
    %269 = vector.load %arg13[%c0_92, %c0_93, %c0_94] : memref<1x8x32xf32, #tpu.memory_space<vmem>>, vector<1x8x32xf32>
    %270 = vector.shape_cast %269 : vector<1x8x32xf32> to vector<8x32xf32>
    %271 = vector.shape_cast %268 : vector<8x32xf32> to vector<1x8x32xf32>
    tpu.vector_store %arg13[%c0_92, %c0_93, %c0_94], %271 {strides = array<i32>} : memref<1x8x32xf32, #tpu.memory_space<vmem>>, vector<1x8x32xf32>,
    return
  }
  func.func @transform_0(%arg0: i32) -> (i32, i32, i32) {
    %c0_i32 = arith.constant 0 : i32
    %c0_i32_0 = arith.constant 0 : i32
    %c0_i32_1 = arith.constant 0 : i32
    return %arg0, %c0_i32, %c0_i32_0 : i32, i32, i32
  }
  func.func @transform_1(%arg0: i32) -> (i32, i32) {
    %c0_i32 = arith.constant 0 : i32
    %c0_i32_0 = arith.constant 0 : i32
    %c0_i32_1 = arith.constant 0 : i32
    return %c0_i32, %c0_i32_0 : i32, i32
  }
  func.func @transform_2(%arg0: i32) -> (i32, i32) {
    %c0_i32 = arith.constant 0 : i32
    %c0_i32_0 = arith.constant 0 : i32
    %c0_i32_1 = arith.constant 0 : i32
    return %c0_i32, %c0_i32_0 : i32, i32
  }
  func.func @transform_3(%arg0: i32) -> (i32, i32) {
    %c0_i32 = arith.constant 0 : i32
    %c0_i32_0 = arith.constant 0 : i32
    %c0_i32_1 = arith.constant 0 : i32
    return %c0_i32, %c0_i32_0 : i32, i32
  }
  func.func @transform_4(%arg0: i32) -> (i32, i32) {
    %c0_i32 = arith.constant 0 : i32
    %c0_i32_0 = arith.constant 0 : i32
    %c0_i32_1 = arith.constant 0 : i32
    return %c0_i32, %c0_i32_0 : i32, i32
  }
  func.func @transform_5(%arg0: i32) -> (i32, i32) {
    %c0_i32 = arith.constant 0 : i32
    %c0_i32_0 = arith.constant 0 : i32
    %c0_i32_1 = arith.constant 0 : i32
    return %c0_i32, %c0_i32_0 : i32, i32
  }
  func.func @transform_6(%arg0: i32) -> (i32, i32) {
    %c0_i32 = arith.constant 0 : i32
    %c0_i32_0 = arith.constant 0 : i32
    %c0_i32_1 = arith.constant 0 : i32
    return %c0_i32, %c0_i32_0 : i32, i32
  }
  func.func @transform_7(%arg0: i32) -> (i32, i32) {
    %c0_i32 = arith.constant 0 : i32
    %c0_i32_0 = arith.constant 0 : i32
    %c0_i32_1 = arith.constant 0 : i32
    return %c0_i32, %c0_i32_0 : i32, i32
  }
  func.func @transform_8(%arg0: i32) -> (i32, i32) {
    %c0_i32 = arith.constant 0 : i32
    %c0_i32_0 = arith.constant 0 : i32
    %c0_i32_1 = arith.constant 0 : i32
    return %c0_i32, %c0_i32_0 : i32, i32
  }
  func.func @transform_9(%arg0: i32) -> (i32, i32) {
    %c0_i32 = arith.constant 0 : i32
    %c0_i32_0 = arith.constant 0 : i32
    %c0_i32_1 = arith.constant 0 : i32
    return %c0_i32, %c0_i32_0 : i32, i32
  }
  func.func @transform_10(%arg0: i32) -> (i32, i32) {
    %c0_i32 = arith.constant 0 : i32
    %c0_i32_0 = arith.constant 0 : i32
    %c0_i32_1 = arith.constant 0 : i32
    return %c0_i32, %c0_i32_0 : i32, i32
  }
  func.func @transform_11(%arg0: i32) -> (i32, i32) {
    %c0_i32 = arith.constant 0 : i32
    %c0_i32_0 = arith.constant 0 : i32
    %c0_i32_1 = arith.constant 0 : i32
    return %c0_i32, %c0_i32_0 : i32, i32
  }
  func.func @transform_12(%arg0: i32) -> (i32, i32, i32) {
    %c0_i32 = arith.constant 0 : i32
    %c0_i32_0 = arith.constant 0 : i32
    %c0_i32_1 = arith.constant 0 : i32
    return %arg0, %c0_i32, %c0_i32_0 : i32, i32, i32
  }
}

</mosaic_0001>

<bundles_post_ra>
// kernel: tpu_custom_call.1
= control target key start
LH: loop header
LB: loop body
LE: loop exit
PB: predicated region body
PF: predicated region fallthrough
CT: control target
= control target key end

     0   :  { %s3752_s0 = inlined_call_operand.hbm [shape: f32[2,8,32], index: 0, kind: input, shape index: {}]   ;;  %s3753_s1 = inlined_call_operand.hbm [shape: f32[1,32], index: 1, kind: input, shape index: {}]   ;;  %s3754_s2 = inlined_call_operand.hbm [shape: f32[1,32], index: 2, kind: input, shape index: {}]   ;;  %s3755_s3 = inlined_call_operand.hbm [shape: bf16[32,96], index: 3, kind: input, shape index: {}]   ;;  %s3756_s4 = inlined_call_operand.hbm [shape: bf16[32,32], index: 4, kind: input, shape index: {}]   ;;  %s3757_s5 = inlined_call_operand.hbm [shape: f32[1,32], index: 5, kind: input, shape index: {}]   ;;  %s3758_s6 = inlined_call_operand.hbm [shape: f32[1,32], index: 6, kind: input, shape index: {}]   ;;  %s3759_s7 = inlined_call_operand.hbm [shape: f32[1,32], index: 7, kind: input, shape index: {}]   ;;  %s3760_s8 = inlined_call_operand.hbm [shape: bf16[32,64], index: 8, kind: input, shape index: {}]   ;;  %s3761_s9 = inlined_call_operand.hbm [shape: f32[1,64], index: 9, kind: input, shape index: {}]   ;;  %s3762_s10 = inlined_call_operand.hbm [shape: bf16[64,32], index: 10, kind: input, shape index: {}]   ;;  %s3763_s11 = inlined_call_operand.hbm [shape: f32[1,32], index: 11, kind: input, shape index: {}]   ;;  %s3764_s12 = inlined_call_operand.hbm [shape: f32[2,8,32], index: 12, kind: output, shape index: {}]  }
   0x1   :  { %3774 = sst [smem:[#allocation33_spill]] %s3753_s1 }
   0x2   :  { %3775 = sst [smem:[#allocation34_spill]] %s3754_s2 }
   0x3   :  { %3776 = sst [smem:[#allocation35_spill]] %s3755_s3 }
   0x4   :  { %3777 = sst [smem:[#allocation36_spill]] %s3764_s12 }
   0x5   :  { %17 = vsyncpa [#allocation4], 0 }
   0x6   :  { %19 = vsyncpa [#allocation4 + $0x1], 0 }
   0x7   :  { %20 = vsyncpa [#allocation7], 0 }
   0x8   :  { %21 = vsyncpa [#allocation10], 0 }
   0x9   :  { %22 = vsyncpa [#allocation13], 0 }
   0xa   :  { %23 = vsyncpa [#allocation16], 0 }
   0xb   :  { %24 = vsyncpa [#allocation19], 0 }
   0xc   :  { %25 = vsyncpa [#allocation22], 0 }
   0xd   :  { %26 = vsyncpa [#allocation5], 0 }
   0xe   :  { %28 = vsyncpa [#allocation5 + $0x1], 0  ;;  %s3117_s21 = smov 0   ;;  %s3119_s22 = smov 0  }
   0xf   :  { %s3121_s23 = smov 0   ;;  %s3123_s24 = smov 0  }
  0x10 LB: > { %s3005_s25 = smov [#allocation6]   ;;  %s3138_s27 = sadd.s32 4294967295, %s3003_s24   ;;  %s3003_s24 = sphi %s3123_s24, %s3813_s24   ;;  %s2999_s23 = sphi %s3121_s23, %s3812_s23   ;;  %s2995_s22 = sphi %s3119_s22, %s3811_s22   ;;  %s2991_s21 = sphi %s3117_s21, %s3810_s21  }
  0x11   : > { %s335_s26 = sshll.u32 %s3005_s25, 4  ;;  %p2074_p0 = scmp.ge.s32.totalorder %s3003_s24, 1  ;;  %s3143_s26 = int_to_ptr.vmem [resolvable:$true] %s335_s26 }
  0x12   : > { %p3771_p1 = scmp.eq.s32.totalorder %s3138_s27, 0  ;;  %p322_p2 = scmp.lt.s32.totalorder %s3003_s24, 3 }
  0x13   : > { %s3006_s29 = smov [#allocation9]   ;;  %s3007_s14 = smov [#allocation12]  }
  0x14   : > { %p3145_p3 = pnand %p2074_p0, %p322_p2  ;;  %s356_s30 = sshll.u32 %s3006_s29, 4  ;;  %s3152_s30 = int_to_ptr.vmem [resolvable:$true] %s356_s30 }
  0x15   : > { %s383_s15 = sshll.u32 %s3007_s14, 4  ;;  %s3781_s1 = sld [smem:[#allocation33_spill]]  ;;  %s3160_s15 = int_to_ptr.vmem [resolvable:$true] %s383_s15 }
  0x16   : > { %s3778_s28 = scalar_select %p3145_p3, 1, 0 }
  0x17   : > { %p2384_p5 = pneg %p3145_p3 }
  0x18   : > { %3779 = sst [smem:[#allocation32_spill]] %s3778_s28 }
  0x19   : > { %p3156_p6 = pnand %p2384_p5, %p3771_p1 }
  0x1b   : > { %s2575_s18 = scalar_lea.hbm %s3781_s1, 16  ;;  %p3170_p8 = pneg %p3156_p6 }
  0x1c   : > { %p2576_p7 = scmp.ne.s32.totalorder %s3781_s1, %s2575_s18  ;;  %p2582_p11 = scmp.lt.u32.totalorder %s2575_s18, %s3781_s1 }
  0x1e   : > { %p2578_p9 = pnand %p3170_p8, %p2576_p7 }
  0x20   : > { %p2579_p10 = pneg %p2578_p9 }
  0x22   : > { %p2584_p12 = pnand %p2582_p11, %p2579_p10 }
  0x24   : > { %2587 = shalt.err (!%p2584_p12)
}
  0x25   : > { %s2588_s16 = scalar_lea.vmem %s3143_s26, 16  ;;  %s2595_s17 = scalar_lea.vmem %s3143_s26, 32 }
  0x26   : > { %p2589_p13 = scmp.ne.s32.totalorder %s3143_s26, %s2588_s16  ;;  %p2596_p5 = scmp.lt.s32.totalorder %s3143_s26, %s3143_s26 }
  0x27   : > { %p2597_p7 = scmp.lt.s32.totalorder %s2595_s17, %s2588_s16 }
  0x28   : > { %p2591_p0 = pnand %p2589_p13, %p3170_p8 }
  0x29   : > { %p2598_p9 = por %p2597_p7, %p2596_p5 }
  0x2a   : > { %p2592_p2 = pneg %p2591_p0 }
  0x2c   : > { %p2599_p4 = pnand %p2598_p9, %p2592_p2 }
  0x2e   : > { %2602 = shalt.err (!%p2599_p4)
}
  0x2f   : > { %2387 = dma.hbm_to_vmem [thread:$0]  (!%p3156_p6), %s3781_s1, 16, %s3143_s26, [#allocation7]  }
  0x30   : > { %s3783_s3 = sld [smem:[#allocation35_spill]] }
  0x36   : > { %s2603_s14 = scalar_lea.hbm %s3783_s3, 256 }
  0x37   : > { %p2604_p10 = scmp.ne.s32.totalorder %s3783_s3, %s2603_s14  ;;  %p2610_p4 = scmp.lt.u32.totalorder %s2603_s14, %s3783_s3 }
  0x39   : > { %p2606_p11 = pnand %p2604_p10, %p3170_p8 }
  0x3b   : > { %p2607_p12 = pneg %p2606_p11 }
  0x3d   : > { %p2612_p13 = pnand %p2610_p4, %p2607_p12 }
  0x3f   : > { %2615 = shalt.err (!%p2612_p13)
}
  0x40   : > { %s2616_s26 = scalar_lea.vmem %s3152_s30, 256  ;;  %p2624_p7 = scmp.lt.s32.totalorder %s3152_s30, %s3152_s30 }
  0x41   : > { %p2617_p0 = scmp.ne.s32.totalorder %s3152_s30, %s2616_s26  ;;  %p2625_p9 = scmp.lt.s32.totalorder %s2616_s26, %s2616_s26 }
  0x43   : > { %p2619_p2 = pnand %p2617_p0, %p3170_p8  ;;  %p2626_p10 = por %p2625_p9, %p2624_p7 }
  0x45   : > { %p2620_p5 = pneg %p2619_p2 }
  0x47   : > { %p2627_p11 = pnand %p2626_p10, %p2620_p5 }
  0x49   : > { %2630 = shalt.err (!%p2627_p11)
}
  0x4a   : > { %s3767_s12 = smov 64   ;;  %s3769_s28 = smov 4  }
  0x4b   : > { %2393 = dma.hbm_to_vmem [thread:$0]  (!%p3156_p6), %s3783_s3, 256, %s3152_s30, [#allocation10], %s3767_s12, %s3767_s12, %s3769_s28  }
  0x4c   : > { %s2631_s14 = scalar_lea.hbm %s3757_s5, 16 }
  0x4d   : > { %p2632_p12 = scmp.ne.s32.totalorder %s3757_s5, %s2631_s14  ;;  %p2638_p0 = scmp.lt.u32.totalorder %s2631_s14, %s3757_s5 }
  0x4f   : > { %p2634_p4 = pnand %p2632_p12, %p3170_p8 }
  0x51   : > { %p2635_p13 = pneg %p2634_p4 }
  0x53   : > { %p2640_p2 = pnand %p2638_p0, %p2635_p13 }
  0x55   : > { %2643 = shalt.err (!%p2640_p2)
}
  0x56   : > { %s2644_s30 = scalar_lea.vmem %s3160_s15, 16  ;;  %s2651_s18 = scalar_lea.vmem %s3160_s15, 32 }
  0x57   : > { %p2645_p5 = scmp.ne.s32.totalorder %s3160_s15, %s2644_s30  ;;  %p2652_p10 = scmp.lt.s32.totalorder %s3160_s15, %s3160_s15 }
  0x58   : > { %p2653_p11 = scmp.lt.s32.totalorder %s2651_s18, %s2644_s30 }
  0x59   : > { %p2647_p7 = pnand %p2645_p5, %p3170_p8 }
  0x5a   : > { %p2654_p12 = por %p2653_p11, %p2652_p10 }
  0x5b   : > { %p2648_p9 = pneg %p2647_p7 }
  0x5d   : > { %p2655_p4 = pnand %p2654_p12, %p2648_p9 }
  0x5f   : > { %2658 = shalt.err (!%p2655_p4)
}
  0x60   : > { %2399 = dma.hbm_to_vmem [thread:$0]  (!%p3156_p6), %s3757_s5, 16, %s3160_s15, [#allocation13]  }
  0x61   : > { %s3010_s20 = smov [#allocation15]   ;;  %s3011_s14 = smov [#allocation18]  }
  0x62   : > { %s405_s29 = sshll.u32 %s3010_s20, 4  ;;  %s429_s16 = sshll.u32 %s3011_s14, 4  ;;  %s406_s29 = int_to_ptr.vmem [resolvable:$true] %s405_s29  ;;  %s430_s16 = int_to_ptr.vmem [resolvable:$true] %s429_s16 }
  0x63   : > { %s2659_s30 = scalar_lea.hbm %s3759_s7, 16 }
  0x64   : > { %p2660_p13 = scmp.ne.s32.totalorder %s3759_s7, %s2659_s30  ;;  %p2666_p5 = scmp.lt.u32.totalorder %s2659_s30, %s3759_s7 }
  0x66   : > { %p2662_p0 = pnand %p2660_p13, %p3170_p8 }
  0x68   : > { %p2663_p2 = pneg %p2662_p0 }
  0x6a   : > { %p2668_p7 = pnand %p2666_p5, %p2663_p2 }
  0x6c   : > { %2671 = shalt.err (!%p2668_p7)
}
  0x6d   : > { %s2672_s15 = scalar_lea.vmem %s406_s29, 16  ;;  %s2679_s19 = scalar_lea.vmem %s406_s29, 32 }
  0x6e   : > { %p2673_p9 = scmp.ne.s32.totalorder %s406_s29, %s2672_s15  ;;  %p2680_p12 = scmp.lt.s32.totalorder %s406_s29, %s406_s29 }
  0x6f   : > { %p2681_p4 = scmp.lt.s32.totalorder %s2679_s19, %s2672_s15 }
  0x70   : > { %p2675_p10 = pnand %p2673_p9, %p3170_p8 }
  0x71   : > { %p2682_p1 = por %p2681_p4, %p2680_p12 }
  0x72   : > { %p2676_p11 = pneg %p2675_p10 }
  0x74   : > { %p2683_p3 = pnand %p2682_p1, %p2676_p11 }
  0x76   : > { %2686 = shalt.err (!%p2683_p3)
}
  0x77   : > { %2405 = dma.hbm_to_vmem [thread:$0]  (!%p3156_p6), %s3759_s7, 16, %s406_s29, [#allocation16]  }
  0x78   : > { %s2687_s17 = scalar_lea.hbm %s3761_s9, 16 }
  0x79   : > { %p2688_p13 = scmp.ne.s32.totalorder %s3761_s9, %s2687_s17  ;;  %p2694_p3 = scmp.lt.u32.totalorder %s2687_s17, %s3761_s9 }
  0x7b   : > { %p2690_p0 = pnand %p2688_p13, %p3170_p8 }
  0x7d   : > { %p2691_p1 = pneg %p2690_p0 }
  0x7f   : > { %p2696_p2 = pnand %p2694_p3, %p2691_p1 }
  0x81   : > { %2699 = shalt.err (!%p2696_p2)
}
  0x82   : > { %s2700_s15 = scalar_lea.vmem %s430_s16, 16  ;;  %s2707_s29 = scalar_lea.vmem %s430_s16, 32 }
  0x83   : > { %p2701_p5 = scmp.ne.s32.totalorder %s430_s16, %s2700_s15  ;;  %p2708_p10 = scmp.lt.s32.totalorder %s430_s16, %s430_s16 }
  0x84   : > { %p2709_p11 = scmp.lt.s32.totalorder %s2707_s29, %s2700_s15 }
  0x85   : > { %p2703_p7 = pnand %p2701_p5, %p3170_p8 }
  0x86   : > { %p2710_p12 = por %p2709_p11, %p2708_p10 }
  0x87   : > { %p2704_p9 = pneg %p2703_p7 }
  0x89   : > { %p2711_p4 = pnand %p2710_p12, %p2704_p9 }
  0x8b   : > { %2714 = shalt.err (!%p2711_p4)
}
  0x8c   : > { %2411 = dma.hbm_to_vmem [thread:$0]  (!%p3156_p6), %s3761_s9, 16, %s430_s16, [#allocation19]  }
  0x8d   : > { %s3012_s20 = smov [#allocation8]   ;;  %s3013_s14 = smov [#allocation11]  }
  0x8e   : > { %s346_s28 = sshll.u32 %s3012_s20, 4  ;;  %s369_s17 = sshll.u32 %s3013_s14, 4  ;;  %s347_s28 = int_to_ptr.vmem [resolvable:$true] %s346_s28  ;;  %s370_s17 = int_to_ptr.vmem [resolvable:$true] %s369_s17 }
  0x8f   : > { %s3784_s2 = sld [smem:[#allocation34_spill]] }
  0x95   : > { %s2715_s18 = scalar_lea.hbm %s3784_s2, 16 }
  0x96   : > { %p2716_p13 = scmp.ne.s32.totalorder %s3784_s2, %s2715_s18  ;;  %p2722_p3 = scmp.lt.u32.totalorder %s2715_s18, %s3784_s2 }
  0x98   : > { %p2718_p0 = pnand %p2716_p13, %p3170_p8 }
  0x9a   : > { %p2719_p1 = pneg %p2718_p0 }
  0x9c   : > { %p2724_p2 = pnand %p2722_p3, %p2719_p1 }
  0x9e   : > { %2727 = shalt.err (!%p2724_p2)
}
  0x9f   : > { %s2728_s16 = scalar_lea.vmem %s347_s28, 16  ;;  %s2735_s12 = scalar_lea.vmem %s347_s28, 32 }
  0xa0   : > { %p2729_p5 = scmp.ne.s32.totalorder %s347_s28, %s2728_s16  ;;  %p2736_p10 = scmp.lt.s32.totalorder %s347_s28, %s347_s28 }
  0xa1   : > { %p2737_p11 = scmp.lt.s32.totalorder %s2735_s12, %s2728_s16 }
  0xa2   : > { %p2731_p7 = pnand %p2729_p5, %p3170_p8 }
  0xa3   : > { %p2738_p12 = por %p2737_p11, %p2736_p10 }
  0xa4   : > { %p2732_p9 = pneg %p2731_p7 }
  0xa6   : > { %p2739_p4 = pnand %p2738_p12, %p2732_p9 }
  0xa8   : > { %2742 = shalt.err (!%p2739_p4)
}
  0xa9   : > { %2390 = dma.hbm_to_vmem [thread:$0]  (!%p3156_p6), %s3784_s2, 16, %s347_s28, [#allocation7]  }
  0xaa   : > { %s2743_s18 = scalar_lea.hbm %s3756_s4, 256 }
  0xab   : > { %p2744_p13 = scmp.ne.s32.totalorder %s3756_s4, %s2743_s18  ;;  %p2750_p3 = scmp.lt.u32.totalorder %s2743_s18, %s3756_s4 }
  0xad   : > { %p2746_p0 = pnand %p2744_p13, %p3170_p8 }
  0xaf   : > { %p2747_p1 = pneg %p2746_p0 }
  0xb1   : > { %p2752_p2 = pnand %p2750_p3, %p2747_p1 }
  0xb3   : > { %2755 = shalt.err (!%p2752_p2)
}
  0xb4   : > { %s2756_s16 = scalar_lea.vmem %s370_s17, 256  ;;  %p2764_p10 = scmp.lt.s32.totalorder %s370_s17, %s370_s17 }
  0xb5   : > { %p2757_p5 = scmp.ne.s32.totalorder %s370_s17, %s2756_s16  ;;  %p2765_p11 = scmp.lt.s32.totalorder %s2756_s16, %s2756_s16 }
  0xb7   : > { %p2759_p7 = pnand %p2757_p5, %p3170_p8  ;;  %p2766_p12 = por %p2765_p11, %p2764_p10 }
  0xb9   : > { %p2760_p9 = pneg %p2759_p7 }
  0xbb   : > { %p2767_p4 = pnand %p2766_p12, %p2760_p9 }
  0xbd   : > { %2770 = shalt.err (!%p2767_p4)
}
  0xbe   : > { %s3785_s28 = smov 4   ;;  %s3786_s12 = smov 64  }
  0xbf   : > { %2396 = dma.hbm_to_vmem [thread:$0]  (!%p3156_p6), %s3756_s4, 256, %s370_s17, [#allocation10], %s3786_s12, %s3786_s12, %s3785_s28  }
  0xc0   : > { %s3014_s26 = smov [#allocation14]   ;;  %s3015_s18 = smov [#allocation17]  }
  0xc1   : > { %s394_s30 = sshll.u32 %s3014_s26, 4  ;;  %s415_s1 = sshll.u32 %s3015_s18, 4  ;;  %s395_s30 = int_to_ptr.vmem [resolvable:$true] %s394_s30  ;;  %s416_s1 = int_to_ptr.vmem [resolvable:$true] %s415_s1 }
  0xc2   : > { %s2771_s19 = scalar_lea.hbm %s3758_s6, 16 }
  0xc3   : > { %p2772_p13 = scmp.ne.s32.totalorder %s3758_s6, %s2771_s19  ;;  %p2778_p3 = scmp.lt.u32.totalorder %s2771_s19, %s3758_s6 }
  0xc5   : > { %p2774_p0 = pnand %p2772_p13, %p3170_p8 }
  0xc7   : > { %p2775_p1 = pneg %p2774_p0 }
  0xc9   : > { %p2780_p2 = pnand %p2778_p3, %p2775_p1 }
  0xcb   : > { %2783 = shalt.err (!%p2780_p2)
}
  0xcc   : > { %s2784_s17 = scalar_lea.vmem %s395_s30, 16  ;;  %s2791_s14 = scalar_lea.vmem %s395_s30, 32 }
  0xcd   : > { %p2785_p5 = scmp.ne.s32.totalorder %s395_s30, %s2784_s17  ;;  %p2792_p10 = scmp.lt.s32.totalorder %s395_s30, %s395_s30 }
  0xce   : > { %p2793_p11 = scmp.lt.s32.totalorder %s2791_s14, %s2784_s17 }
  0xcf   : > { %p2787_p7 = pnand %p2785_p5, %p3170_p8 }
  0xd0   : > { %p2794_p12 = por %p2793_p11, %p2792_p10 }
  0xd1   : > { %p2788_p9 = pneg %p2787_p7 }
  0xd3   : > { %p2795_p4 = pnand %p2794_p12, %p2788_p9 }
  0xd5   : > { %2798 = shalt.err (!%p2795_p4)
}
  0xd6   : > { %2402 = dma.hbm_to_vmem [thread:$0]  (!%p3156_p6), %s3758_s6, 16, %s395_s30, [#allocation13]  }
  0xd7   : > { %s2799_s15 = scalar_lea.hbm %s3760_s8, 256 }
  0xd8   : > { %p2800_p13 = scmp.ne.s32.totalorder %s3760_s8, %s2799_s15  ;;  %p2806_p3 = scmp.lt.u32.totalorder %s2799_s15, %s3760_s8 }
  0xda   : > { %p2802_p0 = pnand %p2800_p13, %p3170_p8 }
  0xdc   : > { %p2803_p1 = pneg %p2802_p0 }
  0xde   : > { %p2808_p2 = pnand %p2806_p3, %p2803_p1 }
  0xe0   : > { %2811 = shalt.err (!%p2808_p2)
}
  0xe1   : > { %s2812_s17 = scalar_lea.vmem %s416_s1, 256  ;;  %p2820_p10 = scmp.lt.s32.totalorder %s416_s1, %s416_s1 }
  0xe2   : > { %p2813_p5 = scmp.ne.s32.totalorder %s416_s1, %s2812_s17  ;;  %p2821_p11 = scmp.lt.s32.totalorder %s2812_s17, %s2812_s17 }
  0xe4   : > { %p2815_p7 = pnand %p2813_p5, %p3170_p8  ;;  %p2822_p12 = por %p2821_p11, %p2820_p10 }
  0xe6   : > { %p2816_p9 = pneg %p2815_p7 }
  0xe8   : > { %p2823_p4 = pnand %p2822_p12, %p2816_p9 }
  0xea   : > { %2826 = shalt.err (!%p2823_p4)
}
  0xeb   : > { %2408 = dma.hbm_to_vmem [thread:$0]  (!%p3156_p6), %s3760_s8, 256, %s416_s1, [#allocation16], %s3786_s12, %s3786_s12, %s3785_s28  }
  0xec   : > { %s3016_s2 = smov [#allocation20]   ;;  %s3017_s3 = smov [#allocation21]  }
  0xed   : > { %s439_s26 = sshll.u32 %s3016_s2, 4  ;;  %s453_s18 = sshll.u32 %s3017_s3, 4  ;;  %s440_s26 = int_to_ptr.vmem [resolvable:$true] %s439_s26  ;;  %s454_s18 = int_to_ptr.vmem [resolvable:$true] %s453_s18 }
  0xee   : > { %s2827_s19 = scalar_lea.hbm %s3762_s10, 512 }
  0xef   : > { %p2828_p13 = scmp.ne.s32.totalorder %s3762_s10, %s2827_s19  ;;  %p2834_p3 = scmp.lt.u32.totalorder %s2827_s19, %s3762_s10 }
  0xf1   : > { %p2830_p0 = pnand %p2828_p13, %p3170_p8 }
  0xf3   : > { %p2831_p1 = pneg %p2830_p0 }
  0xf5   : > { %p2836_p2 = pnand %p2834_p3, %p2831_p1 }
  0xf7   : > { %2839 = shalt.err (!%p2836_p2)
}
  0xf8   : > { %s2840_s1 = scalar_lea.vmem %s440_s26, 512  ;;  %p2848_p10 = scmp.lt.s32.totalorder %s440_s26, %s440_s26 }
  0xf9   : > { %p2841_p5 = scmp.ne.s32.totalorder %s440_s26, %s2840_s1  ;;  %p2849_p11 = scmp.lt.s32.totalorder %s2840_s1, %s2840_s1 }
  0xfb   : > { %p2843_p7 = pnand %p2841_p5, %p3170_p8  ;;  %p2850_p12 = por %p2849_p11, %p2848_p10 }
  0xfd   : > { %p2844_p9 = pneg %p2843_p7 }
  0xff   : > { %p2851_p4 = pnand %p2850_p12, %p2844_p9 }
 0x101   : > { %2854 = shalt.err (!%p2851_p4)
}
 0x102   : > { %2414 = dma.hbm_to_vmem [thread:$0]  (!%p3156_p6), %s3762_s10, 512, %s440_s26, [#allocation19], %s3786_s12, %s3786_s12, %s3785_s28  }
 0x103   : > { %s2855_s29 = scalar_lea.hbm %s3763_s11, 16 }
 0x104   : > { %p2856_p13 = scmp.ne.s32.totalorder %s3763_s11, %s2855_s29  ;;  %p2862_p3 = scmp.lt.u32.totalorder %s2855_s29, %s3763_s11 }
 0x106   : > { %p2858_p0 = pnand %p2856_p13, %p3170_p8 }
 0x108   : > { %p2859_p1 = pneg %p2858_p0 }
 0x10a   : > { %p2864_p2 = pnand %p2862_p3, %p2859_p1 }
 0x10c   : > { %2867 = shalt.err (!%p2864_p2)
}
 0x10d   : > { %s2868_s30 = scalar_lea.vmem %s454_s18, 16  ;;  %s2875_s28 = scalar_lea.vmem %s454_s18, 32 }
 0x10e   : > { %p2869_p5 = scmp.ne.s32.totalorder %s454_s18, %s2868_s30  ;;  %p2876_p10 = scmp.lt.s32.totalorder %s454_s18, %s454_s18 }
 0x10f   : > { %p2877_p11 = scmp.lt.s32.totalorder %s2875_s28, %s2868_s30 }
 0x110   : > { %p2871_p7 = pnand %p2869_p5, %p3170_p8 }
 0x111   : > { %p2878_p12 = por %p2877_p11, %p2876_p10 }
 0x112   : > { %p2872_p9 = pneg %p2871_p7 }
 0x114   : > { %p2879_p4 = pnand %p2878_p12, %p2872_p9 }
 0x116   : > { %2882 = shalt.err (!%p2879_p4)
}
 0x117   : > { %2417 = dma.hbm_to_vmem [thread:$0]  (!%p3156_p6), %s3763_s11, 16, %s454_s18, [#allocation22]  }
 0x118   : > { %s2073_s25 = sadd.s32 4294967294, %s3003_s24   ;;  %s3397_s13 = sadd.s32 1, %s3003_s24  }
 0x119   : > { %s41_s1 = sadd.s32 1, %s2999_s23  ;;  %s38_s14 = ssub.s32 %s3003_s24, %s3397_s13 }
 0x11a   : > { %p48_p8 = scmp.ne.s32.totalorder %s2999_s23, %s2995_s22  ;;  %p39_p13 = scmp.eq.s32.totalorder %s38_s14, 0 }
 0x11b   : > { %p49_p0 = scmp.eq.s32.totalorder %s3003_s24, 0  ;;  %p54_p1 = scmp.ne.s32.totalorder %s2995_s22, %s2991_s21 }
 0x11c   : > { %p309_p3 = scmp.eq.s32.totalorder %s3138_s27, 1  ;;  %p3787_p5 = scmp.eq.s32.totalorder %s3138_s27, 0 }
 0x11d   : > { %s3409_s2 = scalar_select %p39_p13, %s2999_s23, %s41_s1  }
 0x11e   : > { %p50_p2 = por %p49_p0, %p48_p8  ;;  %p3413_p7 = por %p3787_p5, %p54_p1 }
 0x11f   : > { %p3417_p6 = por %p309_p3, %p48_p8  ;;  %p315_p9 = scmp.eq.s32.totalorder %s2073_s25, 1 }
 0x120   : > { %p2437_p10 = scmp.lt.s32.totalorder %s3003_s24, 2  ;;  %s464_s15 = sand.u32 1, %s2999_s23  }
 0x121   : > { %s3789_s18 = scalar_select %p3417_p6, 1, 0 }
 0x122   : > { %p3423_p11 = por %p315_p9, %p54_p1  ;;  %s2087_s19 = sshll.u32 %s464_s15, 3 }
 0x123   : > { %s2088_s16 = sshll.u32 %s3003_s24, 7  ;;  %s468_s28 = scalar_lea.vmem [#allocation3], %s2087_s19 }
 0x124   : > { %s3790_s29 = scalar_select %p3423_p11, 1, 0 }
 0x125   : > { %s3431_s30 = scalar_lea.hbm %s3752_s0, %s2088_s16  ;;  %s475_s12 = sshll.u32 %s468_s28, 4  ;;  %s3437_s12 = int_to_ptr.vmem [resolvable:$true] %s475_s12 }
 0x126   : > { %p3433_p12 = pnand %p2437_p10, %p50_p2  ;;  %s465_s25 = scalar_lea.sflag [#allocation4], %s464_s15 }
 0x127   : > { %s2883_s1 = scalar_lea.hbm %s3431_s30, 128  ;;  %s2888_s16 = scalar_lea.hbm %s3752_s0, 256 }
 0x128   : > { %p2884_p4 = scmp.ne.s32.totalorder %s3431_s30, %s2883_s1  ;;  %p2885_p8 = pneg %p3433_p12 }
 0x129   : > { %p2889_p1 = scmp.lt.u32.totalorder %s3431_s30, %s3752_s0  ;;  %p2890_p3 = scmp.lt.u32.totalorder %s2888_s16, %s2883_s1 }
 0x12a   : > { %p2886_p13 = pnand %p2885_p8, %p2884_p4  ;;  %p2892_p5 = scmp.lt.u32.totalorder %s2883_s1, %s3431_s30 }
 0x12b   : > { %p2891_p2 = por %p2890_p3, %p2889_p1 }
 0x12c   : > { %p2887_p0 = pneg %p2886_p13 }
 0x12d   : > { %p2893_p9 = por %p2892_p5, %p2891_p2 }
 0x12f   : > { %p2894_p10 = pnand %p2893_p9, %p2887_p0 }
 0x131   : > { %2897 = shalt.err (!%p2894_p10)
}
 0x132   : > { %s2898_s15 = scalar_lea.vmem %s3437_s12, 128  ;;  %s3018_s28 = smov [#allocation3]  }
 0x133   : > { %p2899_p4 = scmp.ne.s32.totalorder %s3437_s12, %s2898_s15  ;;  %s2903_s14 = sshll.u32 %s3018_s28, 4  ;;  %s2904_s14 = int_to_ptr.vmem [resolvable:$false] %s2903_s14 }
 0x134   : > { %s2905_s19 = scalar_lea.vmem %s2904_s14, 256  ;;  %p2906_p6 = scmp.lt.s32.totalorder %s3437_s12, %s2904_s14 }
 0x135   : > { %p2901_p13 = pnand %p2899_p4, %p2885_p8  ;;  %p2907_p1 = scmp.lt.s32.totalorder %s2905_s19, %s2898_s15 }
 0x137   : > { %p2902_p11 = pneg %p2901_p13  ;;  %p2908_p3 = por %p2907_p1, %p2906_p6 }
 0x139   : > { %p2909_p2 = pnand %p2908_p3, %p2902_p11 }
 0x13b   : > { %2912 = shalt.err (!%p2909_p2)
}
 0x13c   : > { %2421 = dma.hbm_to_vmem [thread:$0]  (!%p3433_p12), %s3431_s30, 128, %s3437_s12, %s465_s25  }
 0x13d   : > { %s3792_s1 = sld [smem:[#allocation32_spill]] }
 0x143   : > { %p3793_p0 = scmp.ne.s32.totalorder %s3792_s1, 0 }
 0x144   : > { %s3467_s16 = sand.u32 (!%p3793_p0), 1, %s2995_s22  }
 0x145   : > { %484 = sbr.rel (%p3793_p0) target bundleno = 2983 (0xba7), region = 68  ;;  %s2090_s20 = sshll.u32 (!%p3793_p0), %s3467_s16, 3 }
 0x146   : > { %s487_s17 = scalar_lea.sflag (!%p3793_p0), [#allocation4], %s3467_s16  ;;  %s490_s15 = scalar_lea.vmem (!%p3793_p0), [#allocation3], %s2090_s20 }
 0x14c   : > { %2958 = dma.done.wait (%p3413_p7), %s487_s17, 128  }
 0x14d   : > { %2960 = vsyncadd (%p3413_p7), %s487_s17, 4294967168  ;;  %p3794_p6 = scmp.eq.s32.totalorder %s3138_s27, 0 }
 0x14f   : > { %2962 = dma.done.wait (%p3794_p6), [#allocation7], 32   ;;  %p3795_p11 = pmov %p3794_p6 }
 0x150   : > { %p3796_p12 = pmov %p3794_p6 }
 0x151   : > { %2964 = vsyncadd (%p3795_p11), [#allocation7], 4294967264 }
 0x152   : > { %2966 = dma.done.wait (%p3796_p12), [#allocation10], 512   ;;  %p3797_p8 = pmov %p3794_p6 }
 0x153   : > { %p3798_p5 = pmov %p3794_p6 }
 0x154   : > { %2968 = vsyncadd (%p3797_p8), [#allocation10], 4294966784 }
 0x155   : > { %2970 = dma.done.wait (%p3798_p5), [#allocation13], 32   ;;  %p3799_p9 = pmov %p3798_p5 }
 0x156   : > { %p3800_p7 = pmov %p3798_p5 }
 0x157   : > { %2972 = vsyncadd (%p3799_p9), [#allocation13], 4294967264 }
 0x158   : > { %2974 = dma.done.wait (%p3800_p7), [#allocation16], 272   ;;  %p3801_p10 = pmov %p3798_p5 }
 0x159   : > { %p3802_p4 = pmov %p3798_p5 }
 0x15a   : > { %2976 = vsyncadd (%p3801_p10), [#allocation16], 4294967024 }
 0x15b   : > { %2978 = dma.done.wait (%p3802_p4), [#allocation19], 528   ;;  %p3803_p13 = pmov %p3802_p4 }
 0x15c   : > { %p3804_p1 = pmov %p3802_p4 }
 0x15d   : > { %2980 = vsyncadd (%p3803_p13), [#allocation19], 4294966768 }
 0x15e   : > { %2982 = dma.done.wait (%p3804_p1), [#allocation22], 16   ;;  %p3805_p3 = pmov %p3804_p1 }
 0x15f   : > { %vm579_vm0 = vcmask 261120   ;;  %v3501_v0 = vld [vmem:[%s490_s15] sm:$0xff]  ;;  %v2527_v7 = vld [vmem:[#allocation9] sm:$0xff]   ;;  %v3019_v8 = vmov 0.0   ;;  %vm3020_vm1 = vmmov 0   ;;  %s3021_s3 = smov 124  }
 0x160   : > { %2984 = vsyncadd (%p3805_p3), [#allocation22], 4294967280  ;;  %v580_v1 = vsel %vm579_vm0, %v3501_v0, 0.0  ;;  %2204 = vmatprep.subr.bf16.mxu0 %v3019_v8  ;;  %2208 = vmatprep.mubr.msk.bf16.mxu0 %vm3020_vm1, %v3019_v8  ;;  %v2528_v9 = vld [vmem:[#allocation9 + $0x8] sm:$0xff]   ;;  %v2103_v14 = vld [vmem:[#allocation6] ss:$0 sm:$0xff] }
 0x161   : > { %581 = vadd.xlane.f32.xlu0 %v580_v1  ;;  %2205 = vmatpush3.bf16.msra.mxu0 %v2527_v7  ;;  %v2104_v16 = vld [vmem:[#allocation8] ss:$0 sm:$0xff]  ;;  %s3022_s30 = smov 96   ;;  %s3023_s12 = smov 76   ;;  %vm672_vm2 = vcmask 31744   ;;  %vm720_vm3 = vcmask 64512  }
 0x162   : > { %2212 = vmatprep.subr.bf16.mxu1 %v3019_v8  ;;  %2206 = vmatprep.subr.bf16.mxu0 %v3019_v8  ;;  %s3024_s26 = smov 92   ;;  %s3025_s25 = smov 72   ;;  %vm738_vm4 = vcmask 1043456   ;;  %vm783_vm5 = vcmask 27648   ;;  %vm903_vm6 = vcmask 60448   ;;  %vm1023_vm7 = vcmask 93248  }
 0x163   : > { %2214 = vmatprep.mubr.msk.bf16.mxu1 %vm3020_vm1, %v3019_v8  ;;  %s3026_s28 = smov 88   ;;  %s3027_s14 = smov 68   ;;  %vm1143_vm8 = vcmask 126048   ;;  %vm1263_vm9 = vcmask 158848   ;;  %vm1383_vm10 = vcmask 191648   ;;  %vm1503_vm11 = vcmask 224448  }
 0x164   : > { %s3028_s19 = smov 120   ;;  %s3029_s1 = smov 84   ;;  %vm1623_vm12 = vcmask 257248   ;;  %vm1838_vm13 = vcmask 523264  }
 0x165   : > { %2207 = vmatpush3.bf16.msra.mxu0 %v2528_v9  ;;  %s3030_s17 = smov 116   ;;  %s3031_s15 = smov 80  }
 0x166   : > { %2218 = vmatprep.subr.bf16.mxu0 %v3019_v8  ;;  %p3807_p0 = scmp.ne.s32.totalorder %s3789_s18, 0 }
 0x1ee   : > { %v582_v2 = vpop.xlane.xlu0 %581 }
 0x1ef   : > { %v584_v3 = vmul.f32 0.03125, %v582_v2 }
 0x1f1   : > { %v585_v4 = vsub.f32 %v3501_v0, %v584_v3 }
 0x1f3   : > { %v586_v5 = vmul.f32 %v585_v4, %v585_v4 }
 0x1f5   : > { %v587_v6 = vsel %vm579_vm0, %v586_v5, 0.0 }
 0x1f6   : > { %588 = vadd.xlane.f32.xlu0 %v587_v6 }
 0x283   : > { %v589_v10 = vpop.xlane.xlu0 %588 }
 0x284   : > { %v590_v11 = vmul.f32 0.03125, %v589_v10 }
 0x286   : > { %v591_v12 = vadd.f32 1e-05, %v590_v11 }
 0x288   : > { %2537 = vrsqrt.f32 %v591_v12 }
 0x292   : > { %v2538_v13 = vpop.eup %2537 }
 0x293   : > { %v593_v15 = vmul.f32 %v2538_v13, %v585_v4 }
 0x295   : > { %v600_v17 = vmul.f32 %v2103_v14, %v593_v15 }
 0x297   : > { %v607_v18 = vadd.f32 %v2104_v16, %v600_v17 }
 0x299   : > { %v608_v19 = vpack.c.bf16 %v607_v18, %v607_v18 }
 0x29b   : > { %2209 = vmatmul.mubr.msk.bf16.vlgmr.msra.gmra.mrb[0].mxu0 %vm579_vm0, %v608_v19 }
 0x29c   : > { %2220 = vmatprep.mubr.msk.bf16.mxu0 %vm3020_vm1, %v3019_v8 }
 0x36e   : > { %v662_v20 = vpop.f32.mrb[0].mxu0 }
 0x36f   : > { %v3518_v21 = vpack.c.bf16 %v662_v20, %v662_v20  ;;  %v2210_v22 = vpop.f32.mrb[1].mxu0 }
 0x370   : > { %v665_v23 = vpop.f32.mrb[2].mxu0 }
 0x371   : > { %785 = vrot.lane.b32.xlu0 %v3518_v21, %s3021_s3  ;;  %670 = vrot.lane.b32.xlu1 %v3518_v21, %s3022_s30  ;;  %v2211_v24 = vpop.f32.mrb[3].mxu0  ;;  %s3032_s3 = smov 112   ;;  %s3033_s30 = smov 108  }
 0x375   : > { %1267 = vrot.lane.b32.xlu0 %v3518_v21, %s3023_s12  ;;  %787 = vrot.lane.b32.xlu1 %v3518_v21, %s3024_s26  ;;  %s3034_s12 = smov 104   ;;  %s3035_s26 = smov 100  }
 0x379   : > { %1387 = vrot.lane.b32.xlu0 %v3518_v21, %s3025_s25  ;;  %907 = vrot.lane.b32.xlu1 %v3518_v21, %s3026_s28  ;;  %s3036_s25 = smov 60   ;;  %s3037_s28 = smov 64  }
 0x37d   : > { %1507 = vrot.lane.b32.xlu0 %v3518_v21, %s3027_s14  ;;  %905 = vrot.lane.b32.xlu1 %v3518_v21, %s3028_s19  ;;  %s3038_s14 = smov 56   ;;  %s3039_s19 = smov 52  }
 0x381   : > { %1027 = vrot.lane.b32.xlu1 %v3518_v21, %s3029_s1  ;;  %s3040_s1 = smov 44  }
 0x385   : > { %1025 = vrot.lane.b32.xlu1 %v3518_v21, %s3030_s17  ;;  %s3041_s17 = smov 40  }
 0x389   : > { %1147 = vrot.lane.b32.xlu1 %v3518_v21, %s3031_s15  ;;  %s3042_s15 = smov 36  }
 0x38d   : > { %1145 = vrot.lane.b32.xlu1 %v3518_v21, %s3032_s3  ;;  %s3043_s3 = smov 48  }
 0x391   : > { %1265 = vrot.lane.b32.xlu1 %v3518_v21, %s3033_s30  ;;  %s3044_s30 = smov 4  }
 0x395   : > { %1385 = vrot.lane.b32.xlu1 %v3518_v21, %s3034_s12  ;;  %s3045_s12 = smov 8  }
 0x399   : > { %1505 = vrot.lane.b32.xlu1 %v3518_v21, %s3035_s26  ;;  %s3046_s26 = smov 12  }
 0x3e3   : > { %v671_v25 = vpop.permute.xlu1 %670  ;;  %v786_v31 = vpop.permute.xlu0 %785 }
 0x3e4   : > { %v677_v26 = vsel %vm672_vm2, %v671_v25, 0 }
 0x3e5   : > { %2213 = vmatpush3.bf16.xpose.msra.mxu1 %v677_v26 }
 0x3e6   : > { %2224 = vmatprep.subr.bf16.mxu1 %v3019_v8 }
 0x3e7   : > { %v788_v27 = vpop.permute.xlu1 %787  ;;  %v1268_v38 = vpop.permute.xlu0 %1267 }
 0x3e8   : > { %v793_v29 = vsel %vm672_vm2, %v788_v27, 0  ;;  %v1273_v40 = vsel %vm672_vm2, %v1268_v38, 0 }
 0x3eb   : > { %v908_v28 = vpop.permute.xlu1 %907  ;;  %v1388_v41 = vpop.permute.xlu0 %1387 }
 0x3ec   : > { %2215 = vmatmul.mubr.msk.bf16.vlgmr.msra.gmra.mrb[0].mxu1 %vm672_vm2, %v3518_v21  ;;  %v913_v32 = vsel %vm672_vm2, %v908_v28, 0  ;;  %v1393_v43 = vsel %vm672_vm2, %v1388_v41, 0 }
 0x3ed   : > { %2225 = vmatpush3.bf16.xpose.msra.mxu1 %v793_v29  ;;  %2226 = vmatprep.mubr.msk.bf16.mxu1 %vm3020_vm1, %v3019_v8 }
 0x3ee   : > { %2236 = vmatprep.subr.bf16.mxu1 %v3019_v8 }
 0x3ef   : > { %v906_v30 = vpop.permute.xlu1 %905  ;;  %v1508_v44 = vpop.permute.xlu0 %1507 }
 0x3f0   : > { %v1513_v46 = vsel %vm672_vm2, %v1508_v44, 0 }
 0x3f3   : > { %v1028_v33 = vpop.permute.xlu1 %1027 }
 0x3f4   : > { %2227 = vmatmul.mubr.msk.bf16.vlgmr.msra.gmra.mrb[4].mxu1 %vm672_vm2, %v786_v31  ;;  %v1033_v35 = vsel %vm672_vm2, %v1028_v33, 0 }
 0x3f5   : > { %2237 = vmatpush3.bf16.xpose.msra.mxu1 %v913_v32  ;;  %2238 = vmatprep.mubr.msk.bf16.mxu1 %vm3020_vm1, %v3019_v8 }
 0x3f6   : > { %2248 = vmatprep.subr.bf16.mxu1 %v3019_v8 }
 0x3f7   : > { %v1026_v34 = vpop.permute.xlu1 %1025 }
 0x3fb   : > { %v1148_v36 = vpop.permute.xlu1 %1147 }
 0x3fc   : > { %2239 = vmatmul.mubr.msk.bf16.vlgmr.msra.gmra.mrb[8].mxu1 %vm672_vm2, %v906_v30  ;;  %v1153_v37 = vsel %vm672_vm2, %v1148_v36, 0 }
 0x3fd   : > { %2249 = vmatpush3.bf16.xpose.msra.mxu1 %v1033_v35  ;;  %2250 = vmatprep.mubr.msk.bf16.mxu1 %vm3020_vm1, %v3019_v8 }
 0x3fe   : > { %2260 = vmatprep.subr.bf16.mxu1 %v3019_v8 }
 0x3ff   : > { %v1146_v39 = vpop.permute.xlu1 %1145 }
 0x403   : > { %v1266_v42 = vpop.permute.xlu1 %1265 }
 0x404   : > { %2251 = vmatmul.mubr.msk.bf16.vlgmr.msra.gmra.mrb[12].mxu1 %vm672_vm2, %v1026_v34 }
 0x405   : > { %2261 = vmatpush3.bf16.xpose.msra.mxu1 %v1153_v37  ;;  %2262 = vmatprep.mubr.msk.bf16.mxu1 %vm3020_vm1, %v3019_v8 }
 0x406   : > { %2272 = vmatprep.subr.bf16.mxu1 %v3019_v8 }
 0x407   : > { %v1386_v45 = vpop.permute.xlu1 %1385 }
 0x40b   : > { %v1506_v47 = vpop.permute.xlu1 %1505 }
 0x40c   : > { %2263 = vmatmul.mubr.msk.bf16.vlgmr.msra.gmra.mrb[16].mxu1 %vm672_vm2, %v1146_v39 }
 0x40d   : > { %2273 = vmatpush3.bf16.xpose.msra.mxu1 %v1273_v40  ;;  %2274 = vmatprep.mubr.msk.bf16.mxu1 %vm3020_vm1, %v3019_v8 }
 0x40e   : > { %2284 = vmatprep.subr.bf16.mxu1 %v3019_v8 }
 0x414   : > { %2275 = vmatmul.mubr.msk.bf16.vlgmr.msra.gmra.mrb[20].mxu1 %vm672_vm2, %v1266_v42 }
 0x415   : > { %2285 = vmatpush3.bf16.xpose.msra.mxu1 %v1393_v43  ;;  %2286 = vmatprep.mubr.msk.bf16.mxu1 %vm3020_vm1, %v3019_v8 }
 0x416   : > { %2296 = vmatprep.subr.bf16.mxu1 %v3019_v8 }
 0x41c   : > { %2287 = vmatmul.mubr.msk.bf16.vlgmr.msra.gmra.mrb[24].mxu1 %vm672_vm2, %v1386_v45 }
 0x41d   : > { %2297 = vmatpush3.bf16.xpose.msra.mxu1 %v1513_v46  ;;  %2298 = vmatprep.mubr.msk.bf16.mxu1 %vm3020_vm1, %v3019_v8 }
 0x41e   : > { %2308 = vmatprep.subr.bf16.mxu1 %v3019_v8 }
 0x424   : > { %2299 = vmatmul.mubr.msk.bf16.vlgmr.msra.gmra.mrb[28].mxu1 %vm672_vm2, %v1506_v47 }
 0x425   : > { %2312 = vmatprep.mubr.msk.bf16.mxu1 %vm3020_vm1, %v3019_v8 }
 0x4bf   : > { %v713_v48 = vpop.f32.mrb[0].mxu1 }
 0x4c0   : > { %v719_v49 = vmul.f32 0.5, %v713_v48  ;;  %v2216_v50 = vpop.f32.mrb[1].mxu1 }
 0x4c1   : > { %v716_v51 = vpop.f32.mrb[2].mxu1 }
 0x4c2   : > { %v2217_v52 = vpop.f32.mrb[3].mxu1  ;;  %v721_v53 = vsel %vm720_vm3, %v719_v49, -inf }
 0x4c3   : > { %722 = vmax.xlane.f32.xlu0 %v721_v53 }
 0x4c7   : > { %v829_v54 = vpop.f32.mrb[4].mxu1 }
 0x4c8   : > { %v835_v55 = vmul.f32 0.5, %v829_v54  ;;  %v2228_v56 = vpop.f32.mrb[5].mxu1 }
 0x4c9   : > { %v832_v57 = vpop.f32.mrb[6].mxu1 }
 0x4ca   : > { %v2229_v58 = vpop.f32.mrb[7].mxu1  ;;  %v836_v59 = vsel %vm720_vm3, %v835_v55, -inf }
 0x4cb   : > { %837 = vmax.xlane.f32.xlu1 %v836_v59 }
 0x4cf   : > { %v949_v60 = vpop.f32.mrb[8].mxu1 }
 0x4d0   : > { %v955_v61 = vmul.f32 0.5, %v949_v60  ;;  %v2240_v62 = vpop.f32.mrb[9].mxu1 }
 0x4d1   : > { %v952_v63 = vpop.f32.mrb[10].mxu1 }
 0x4d2   : > { %v2241_v1 = vpop.f32.mrb[11].mxu1  ;;  %v956_v2 = vsel %vm720_vm3, %v955_v61, -inf }
 0x4d3   : > { %957 = vmax.xlane.f32.xlu0 %v956_v2 }
 0x4d7   : > { %v1069_v3 = vpop.f32.mrb[12].mxu1 }
 0x4d8   : > { %v3579_v4 = vmul.f32 0.5, %v1069_v3  ;;  %v2252_v5 = vpop.f32.mrb[13].mxu1 }
 0x4d9   : > { %v1072_v6 = vpop.f32.mrb[14].mxu1 }
 0x4da   : > { %v2253_v7 = vpop.f32.mrb[15].mxu1  ;;  %v1076_v9 = vsel %vm720_vm3, %v3579_v4, -inf }
 0x4db   : > { %1077 = vmax.xlane.f32.xlu0 %v1076_v9 }
 0x4df   : > { %v1189_v10 = vpop.f32.mrb[16].mxu1 }
 0x4e0   : > { %v3583_v11 = vmul.f32 0.5, %v1189_v10  ;;  %v2264_v12 = vpop.f32.mrb[17].mxu1 }
 0x4e1   : > { %v1192_v13 = vpop.f32.mrb[18].mxu1 }
 0x4e2   : > { %v2265_v14 = vpop.f32.mrb[19].mxu1  ;;  %v1196_v15 = vsel %vm720_vm3, %v3583_v11, -inf }
 0x4e3   : > { %1197 = vmax.xlane.f32.xlu1 %v1196_v15 }
 0x4e7   : > { %v1309_v16 = vpop.f32.mrb[20].mxu1 }
 0x4e8   : > { %v3587_v17 = vmul.f32 0.5, %v1309_v16  ;;  %v2276_v18 = vpop.f32.mrb[21].mxu1 }
 0x4e9   : > { %v1312_v19 = vpop.f32.mrb[22].mxu1 }
 0x4ea   : > { %v2277_v20 = vpop.f32.mrb[23].mxu1  ;;  %v1316_v22 = vsel %vm720_vm3, %v3587_v17, -inf }
 0x4eb   : > { %1317 = vmax.xlane.f32.xlu0 %v1316_v22 }
 0x4ef   : > { %v1429_v23 = vpop.f32.mrb[24].mxu1 }
 0x4f0   : > { %v1435_v24 = vmul.f32 0.5, %v1429_v23  ;;  %v2288_v25 = vpop.f32.mrb[25].mxu1 }
 0x4f1   : > { %v1432_v26 = vpop.f32.mrb[26].mxu1 }
 0x4f2   : > { %v2289_v27 = vpop.f32.mrb[27].mxu1  ;;  %v1436_v28 = vsel %vm720_vm3, %v1435_v24, -inf }
 0x4f3   : > { %1437 = vmax.xlane.f32.xlu1 %v1436_v28 }
 0x4f7   : > { %v1549_v29 = vpop.f32.mrb[28].mxu1 }
 0x4f8   : > { %v2300_v30 = vpop.f32.mrb[29].mxu1  ;;  %v3594_v33 = vmul.f32 0.5, %v1549_v29 }
 0x4f9   : > { %v1552_v31 = vpop.f32.mrb[30].mxu1 }
 0x4fa   : > { %v2301_v32 = vpop.f32.mrb[31].mxu1  ;;  %v1556_v34 = vsel %vm720_vm3, %v3594_v33, -inf }
 0x501   : > { %848 = vrot.lane.b32.xlu0 %v3518_v21, %s3036_s25  ;;  %s3047_s25 = smov 16  }
 0x504   : > { %733 = vrot.lane.b32.xlu1 %v3518_v21, %s3037_s28  ;;  %s3048_s28 = smov 20  }
 0x520   : > { %1557 = vmax.xlane.f32.xlu0 %v1556_v34 }
 0x550   : > { %v723_v35 = vpop.xlane.xlu0 %722 }
 0x551   : > { %v724_v36 = vsub.f32 %v719_v49, %v723_v35 }
 0x553   : > { %v725_v37 = vmul.f32 1.442695, %v724_v36 }
 0x555   : > { %2539 = vpow2.f32 %v725_v37 }
 0x558   : > { %v838_v38 = vpop.xlane.xlu1 %837 }
 0x559   : > { %v839_v39 = vsub.f32 %v835_v55, %v838_v38 }
 0x55b   : > { %v840_v40 = vmul.f32 1.442695, %v839_v39 }
 0x55d   : > { %2541 = vpow2.f32 %v840_v40 }
 0x55f   : > { %v3598_v41 = vpop.eup %2539 }
 0x560   : > { %v958_v42 = vpop.xlane.xlu0 %957  ;;  %v727_v43 = vsel %vm720_vm3, %v3598_v41, 0.0 }
 0x561   : > { %v959_v44 = vsub.f32 %v955_v61, %v958_v42  ;;  %728 = vadd.xlane.f32.xlu1 %v727_v43 }
 0x563   : > { %v960_v45 = vmul.f32 1.442695, %v959_v44 }
 0x565   : > { %2543 = vpow2.f32 %v960_v45 }
 0x567   : > { %v3602_v46 = vpop.eup %2541 }
 0x568   : > { %v842_v47 = vsel %vm720_vm3, %v3602_v46, 0.0  ;;  %v1078_v53 = vpop.xlane.xlu0 %1077 }
 0x569   : > { %843 = vadd.xlane.f32.xlu0 %v842_v47  ;;  %v1079_v55 = vsub.f32 %v3579_v4, %v1078_v53 }
 0x56b   : > { %v1080_v56 = vmul.f32 1.442695, %v1079_v55 }
 0x56d   : > { %2545 = vpow2.f32 %v1080_v56 }
 0x56f   : > { %v3606_v48 = vpop.eup %2543 }
 0x570   : > { %v962_v49 = vsel %vm720_vm3, %v3606_v48, 0.0  ;;  %v1198_v50 = vpop.xlane.xlu1 %1197 }
 0x571   : > { %963 = vadd.xlane.f32.xlu1 %v962_v49  ;;  %v1199_v57 = vsub.f32 %v3583_v11, %v1198_v50 }
 0x573   : > { %v1200_v60 = vmul.f32 1.442695, %v1199_v57 }
 0x575   : > { %2547 = vpow2.f32 %v1200_v60 }
 0x577   : > { %v3617_v1 = vpop.eup %2545 }
 0x578   : > { %v1318_v58 = vpop.xlane.xlu0 %1317  ;;  %v1082_v2 = vsel %vm720_vm3, %v3617_v1, 0.0 }
 0x579   : > { %v1319_v59 = vsub.f32 %v3587_v17, %v1318_v58 }
 0x57b   : > { %v1320_v62 = vmul.f32 1.442695, %v1319_v59 }
 0x57c   : > { %v849_v10 = vpop.permute.xlu0 %848 }
 0x57d   : > { %2549 = vpow2.f32 %v1320_v62  ;;  %v854_v22 = vsel %vm738_vm4, %v849_v10, 0 }
 0x57f   : > { %968 = vrot.lane.b32.xlu0 %v3518_v21, %s3038_s14  ;;  %v3621_v3 = vpop.eup %2547  ;;  %s3049_s14 = smov 24  }
 0x580   : > { %v1438_v51 = vpop.xlane.xlu1 %1437  ;;  %v1202_v5 = vsel %vm720_vm3, %v3621_v3, 0.0 }
 0x581   : > { %v1439_v61 = vsub.f32 %v1435_v24, %v1438_v51 }
 0x582   : > { %1088 = vrot.lane.b32.xlu1 %v3518_v21, %s3039_s19  ;;  %s3050_s19 = smov 28  }
 0x583   : > { %v1440_v63 = vmul.f32 1.442695, %v1439_v61 }
 0x584   : > { %v734_v52 = vpop.permute.xlu1 %733 }
 0x585   : > { %v740_v54 = vsel %vm738_vm4, %v734_v52, 0  ;;  %2551 = vpow2.f32 %v1440_v63 }
 0x586   : > { %2219 = vmatpush3.bf16.msra.mxu0 %v740_v54 }
 0x587   : > { %2230 = vmatprep.subr.bf16.mxu0 %v3019_v8  ;;  %v3623_v4 = vpop.eup %2549 }
 0x588   : > { %v1322_v7 = vsel %vm720_vm3, %v3623_v4, 0.0 }
 0x58f   : > { %v3627_v6 = vpop.eup %2551 }
 0x590   : > { %v1442_v9 = vsel %vm720_vm3, %v3627_v6, 0.0 }
 0x59e   : > { %1083 = vadd.xlane.f32.xlu0 %v1082_v2 }
 0x5a2   : > { %1203 = vadd.xlane.f32.xlu0 %v1202_v5 }
 0x5a6   : > { %1323 = vadd.xlane.f32.xlu1 %v1322_v7  ;;  %1443 = vadd.xlane.f32.xlu0 %v1442_v9 }
 0x5ad   : > { %v1558_v11 = vpop.xlane.xlu0 %1557 }
 0x5ae   : > { %v1559_v12 = vsub.f32 %v3594_v33, %v1558_v11 }
 0x5b0   : > { %v1560_v13 = vmul.f32 1.442695, %v1559_v12 }
 0x5b2   : > { %2553 = vpow2.f32 %v1560_v13 }
 0x5b7   : > { %1328 = vrot.lane.b32.xlu1 %v3518_v21, %s3040_s1  ;;  %s2148_s1 = sshll.u32 %s3138_s27, 7  ;;  %s1885_s27 = scalar_lea.sflag [#allocation5], %s3467_s16 }
 0x5bb   : > { %1448 = vrot.lane.b32.xlu1 %v3518_v21, %s3041_s17  ;;  %s574_s17 = scalar_lea.vmem [#allocation23], %s2090_s20 }
 0x5bc   : > { %v3636_v14 = vpop.eup %2553 }
 0x5bd   : > { %v1562_v15 = vsel %vm720_vm3, %v3636_v14, 0.0 }
 0x5be   : > { %1563 = vadd.xlane.f32.xlu0 %v1562_v15 }
 0x5bf   : > { %1568 = vrot.lane.b32.xlu1 %v3518_v21, %s3042_s15  ;;  %s1898_s15 = sshll.u32 %s574_s17, 4  ;;  %s3709_s15 = int_to_ptr.vmem [resolvable:$true] %s1898_s15 }
 0x5c0   : > { %s2913_s20 = scalar_lea.vmem %s3709_s15, 128 }
 0x5c1   : > { %p2914_p2 = scmp.ne.s32.totalorder %s3709_s15, %s2913_s20 }
 0x5c3   : > { %p2915_p6 = pnand %p2914_p2, %p3807_p0 }
 0x5c5   : > { %p2916_p11 = pneg %p2915_p6 }
 0x5d4   : > { %1208 = vrot.lane.b32.xlu0 %v3518_v21, %s3043_s3 }
 0x5ee   : > { %v729_v16 = vpop.xlane.xlu1 %728 }
 0x5ef   : > { %2555 = vrcp.f32 %v729_v16 }
 0x5f6   : > { %v844_v17 = vpop.xlane.xlu0 %843 }
 0x5f7   : > { %2557 = vrcp.f32 %v844_v17 }
 0x5f9   : > { %v2556_v18 = vpop.eup %2555 }
 0x5fa   : > { %v731_v19 = vmul.f32 %v2556_v18, %v3598_v41  ;;  %v969_v25 = vpop.permute.xlu0 %968 }
 0x5fb   : > { %v974_v27 = vsel %vm738_vm4, %v969_v25, 0 }
 0x5fc   : > { %v732_v20 = vpack.c.bf16 %v731_v19, %v731_v19 }
 0x5fe   : > { %2221 = vmatmul.mubr.msk.bf16.vlgmr.msra.gmra.mrb[4].mxu0 %vm720_vm3, %v732_v20  ;;  %v964_v23 = vpop.xlane.xlu1 %963 }
 0x5ff   : > { %2231 = vmatpush3.bf16.msra.mxu0 %v854_v22  ;;  %2559 = vrcp.f32 %v964_v23  ;;  %2232 = vmatprep.mubr.msk.bf16.mxu0 %vm3020_vm1, %v3019_v8 }
 0x600   : > { %2242 = vmatprep.subr.bf16.mxu0 %v3019_v8 }
 0x601   : > { %v2558_v21 = vpop.eup %2557 }
 0x602   : > { %v846_v24 = vmul.f32 %v2558_v21, %v3602_v46  ;;  %v1089_v30 = vpop.permute.xlu1 %1088 }
 0x603   : > { %v1094_v32 = vsel %vm738_vm4, %v1089_v30, 0 }
 0x604   : > { %v847_v26 = vpack.c.bf16 %v846_v24, %v846_v24 }
 0x606   : > { %2233 = vmatmul.mubr.msk.bf16.vlgmr.msra.gmra.mrb[8].mxu0 %vm720_vm3, %v847_v26 }
 0x607   : > { %2243 = vmatpush3.bf16.msra.mxu0 %v974_v27  ;;  %2244 = vmatprep.mubr.msk.bf16.mxu0 %vm3020_vm1, %v3019_v8 }
 0x608   : > { %2254 = vmatprep.subr.bf16.mxu0 %v3019_v8 }
 0x609   : > { %v2560_v28 = vpop.eup %2559 }
 0x60a   : > { %v966_v29 = vmul.f32 %v2560_v28, %v3606_v48 }
 0x60c   : > { %v967_v31 = vpack.c.bf16 %v966_v29, %v966_v29  ;;  %v2529_v29 = vld [vmem:[#allocation11] sm:$0xff]  }
 0x60d   : > { %2309 = vmatpush3.bf16.msra.mxu1 %v2529_v29 }
 0x60e   : > { %2245 = vmatmul.mubr.msk.bf16.vlgmr.msra.gmra.mrb[12].mxu0 %vm720_vm3, %v967_v31  ;;  %v2530_v31 = vld [vmem:[#allocation11 + $0x8] sm:$0xff]   ;;  %2310 = vmatprep.subr.bf16.mxu1 %v3019_v8 }
 0x60f   : > { %2255 = vmatpush3.bf16.msra.mxu0 %v1094_v32  ;;  %2256 = vmatprep.mubr.msk.bf16.mxu0 %vm3020_vm1, %v3019_v8 }
 0x610   : > { %2266 = vmatprep.subr.bf16.mxu0 %v3019_v8 }
 0x611   : > { %2311 = vmatpush3.bf16.msra.mxu1 %v2530_v31 }
 0x612   : > { %2324 = vmatprep.subr.bf16.mxu1 %v3019_v8 }
 0x62b   : > { %v1084_v33 = vpop.xlane.xlu0 %1083 }
 0x62c   : > { %2561 = vrcp.f32 %v1084_v33 }
 0x62f   : > { %v1204_v37 = vpop.xlane.xlu0 %1203 }
 0x630   : > { %2563 = vrcp.f32 %v1204_v37 }
 0x633   : > { %v1324_v38 = vpop.xlane.xlu1 %1323  ;;  %v1444_v39 = vpop.xlane.xlu0 %1443 }
 0x634   : > { %2565 = vrcp.f32 %v1324_v38 }
 0x635   : > { %2567 = vrcp.f32 %v1444_v39 }
 0x636   : > { %v2562_v34 = vpop.eup %2561 }
 0x637   : > { %v1086_v35 = vmul.f32 %v2562_v34, %v3617_v1  ;;  %v1329_v45 = vpop.permute.xlu1 %1328 }
 0x638   : > { %v1334_v48 = vsel %vm738_vm4, %v1329_v45, 0 }
 0x639   : > { %v1087_v36 = vpack.c.bf16 %v1086_v35, %v1086_v35 }
 0x63a   : > { %v2564_v40 = vpop.eup %2563 }
 0x63b   : > { %2257 = vmatmul.mubr.msk.bf16.vlgmr.msra.gmra.mrb[16].mxu0 %vm720_vm3, %v1087_v36  ;;  %v1206_v42 = vmul.f32 %v2564_v40, %v3621_v3  ;;  %v1449_v50 = vpop.permute.xlu1 %1448 }
 0x63c   : > { %2268 = vmatprep.mubr.msk.bf16.mxu0 %vm3020_vm1, %v3019_v8  ;;  %v1454_v53 = vsel %vm738_vm4, %v1449_v50, 0 }
 0x63d   : > { %v1207_v46 = vpack.c.bf16 %v1206_v42, %v1206_v42 }
 0x63e   : > { %v2566_v47 = vpop.eup %2565 }
 0x63f   : > { %v1326_v49 = vmul.f32 %v2566_v47, %v3623_v4  ;;  %v2568_v52 = vpop.eup %2567  ;;  %v1569_v55 = vpop.permute.xlu1 %1568 }
 0x640   : > { %v1446_v54 = vmul.f32 %v2568_v52, %v3627_v6  ;;  %v1574_v58 = vsel %vm738_vm4, %v1569_v55, 0 }
 0x641   : > { %v1327_v51 = vpack.c.bf16 %v1326_v49, %v1326_v49  ;;  %v2131_v49 = vld [vmem:[#allocation12] ss:$0 sm:$0xff] }
 0x642   : > { %v1447_v56 = vpack.c.bf16 %v1446_v54, %v1446_v54 }
 0x64b   : > { %v1564_v41 = vpop.xlane.xlu0 %1563 }
 0x64c   : > { %2569 = vrcp.f32 %v1564_v41 }
 0x64f   : > { %v1209_v43 = vpop.permute.xlu0 %1208 }
 0x650   : > { %v1214_v44 = vsel %vm738_vm4, %v1209_v43, 0 }
 0x651   : > { %2267 = vmatpush3.bf16.msra.mxu0 %v1214_v44 }
 0x652   : > { %2278 = vmatprep.subr.bf16.mxu0 %v3019_v8 }
 0x654   : > { %2269 = vmatmul.mubr.msk.bf16.vlgmr.msra.gmra.mrb[20].mxu0 %vm720_vm3, %v1207_v46 }
 0x655   : > { %2279 = vmatpush3.bf16.msra.mxu0 %v1334_v48  ;;  %2280 = vmatprep.mubr.msk.bf16.mxu0 %vm3020_vm1, %v3019_v8 }
 0x656   : > { %2290 = vmatprep.subr.bf16.mxu0 %v3019_v8  ;;  %v2570_v57 = vpop.eup %2569 }
 0x657   : > { %v1566_v59 = vmul.f32 %v2570_v57, %v3636_v14 }
 0x659   : > { %v1567_v60 = vpack.c.bf16 %v1566_v59, %v1566_v59 }
 0x65c   : > { %2281 = vmatmul.mubr.msk.bf16.vlgmr.msra.gmra.mrb[24].mxu0 %vm720_vm3, %v1327_v51 }
 0x65d   : > { %2291 = vmatpush3.bf16.msra.mxu0 %v1454_v53  ;;  %2292 = vmatprep.mubr.msk.bf16.mxu0 %vm3020_vm1, %v3019_v8 }
 0x65e   : > { %2302 = vmatprep.subr.bf16.mxu0 %v3019_v8 }
 0x664   : > { %2293 = vmatmul.mubr.msk.bf16.vlgmr.msra.gmra.mrb[28].mxu0 %vm720_vm3, %v1447_v56 }
 0x665   : > { %2303 = vmatpush3.bf16.msra.mxu0 %v1574_v58  ;;  %2304 = vmatprep.mubr.msk.bf16.mxu0 %vm3020_vm1, %v3019_v8 }
 0x666   : > { %2316 = vmatprep.subr.bf16.mxu0 %v3019_v8 }
 0x66c   : > { %2305 = vmatmul.mubr.msk.bf16.vlgmr.msra.gmra.mrb[32].mxu0 %vm720_vm3, %v1567_v60 }
 0x66d   : > { %2320 = vmatprep.mubr.msk.bf16.mxu0 %vm3020_vm1, %v3019_v8 }
 0x6d1   : > { %v776_v61 = vpop.f32.mrb[4].mxu0 }
 0x6d2   : > { %v782_v62 = vpack.c.bf16 %v776_v61, %v776_v61  ;;  %v2222_v63 = vpop.f32.mrb[5].mxu0 }
 0x6d3   : > { %v779_v1 = vpop.f32.mrb[6].mxu0  ;;  %v2532_v63 = vld [vmem:[#allocation17 + $0x8] sm:$0xff]  }
 0x6d4   : > { %784 = vst.msk [vmem:[#allocation2] sm:$0xf] %vm783_vm5, %v782_v62  ;;  %v2223_v2 = vpop.f32.mrb[7].mxu0  ;;  %v2531_v62 = vld [vmem:[#allocation17] sm:$0xff]  }
 0x6d5   : > { %2317 = vmatpush3.bf16.msra.mxu0 %v2531_v62 }
 0x6d6   : > { %2318 = vmatprep.subr.bf16.mxu0 %v3019_v8 }
 0x6d9   : > { %v890_v3 = vpop.f32.mrb[8].mxu0  ;;  %2319 = vmatpush3.bf16.msra.mxu0 %v2532_v63 }
 0x6da   : > { %v2151_v4 = vpack.c.bf16 %v890_v3, %v890_v3  ;;  %v2234_v5 = vpop.f32.mrb[9].mxu0 }
 0x6db   : > { %v893_v6 = vpop.f32.mrb[10].mxu0 }
 0x6dc   : > { %900 = vrot.lane.b32.xlu1 %v2151_v4, %s3044_s30  ;;  %v2235_v7 = vpop.f32.mrb[11].mxu0  ;;  %v2135_v4 = vld [vmem:[#allocation14] ss:$0 sm:$0xff]  ;;  %v2136_v6 = vld [vmem:[#allocation15] ss:$0 sm:$0xff] }
 0x6e1   : > { %v1010_v9 = vpop.f32.mrb[12].mxu0 }
 0x6e2   : > { %v2152_v10 = vpack.c.bf16 %v1010_v9, %v1010_v9  ;;  %v2246_v11 = vpop.f32.mrb[13].mxu0 }
 0x6e3   : > { %v1013_v12 = vpop.f32.mrb[14].mxu0  ;;  %v2533_v11 = vld [vmem:[#allocation20] sm:$0xff]  }
 0x6e4   : > { %1020 = vrot.lane.b32.xlu1 %v2152_v10, %s3045_s12  ;;  %v2247_v13 = vpop.f32.mrb[15].mxu0  ;;  %v2534_v12 = vld [vmem:[#allocation20 + $0x8] sm:$0xff]   ;;  %s3806_s12 = sld [smem:[#allocation36_spill]] }
 0x6e5   : > { %v2535_v13 = vld [vmem:[#allocation20 + $0x10] sm:$0xff]  }
 0x70e   : > { %v1130_v14 = vpop.f32.mrb[16].mxu0 }
 0x70f   : > { %v2153_v15 = vpack.c.bf16 %v1130_v14, %v1130_v14  ;;  %v2258_v16 = vpop.f32.mrb[17].mxu0  ;;  %v2536_v14 = vld [vmem:[#allocation20 + $0x18] sm:$0xff]  }
 0x710   : > { %v1133_v17 = vpop.f32.mrb[18].mxu0 }
 0x711   : > { %1140 = vrot.lane.b32.xlu0 %v2153_v15, %s3046_s26  ;;  %v2259_v18 = vpop.f32.mrb[19].mxu0  ;;  %v2137_v15 = vld [vmem:[#allocation18] ss:$0 sm:$0xff]  ;;  %s3707_s26 = scalar_lea.hbm %s3806_s12, %s2148_s1 }
 0x727   : > { %v1250_v19 = vpop.f32.mrb[20].mxu0 }
 0x728   : > { %v2154_v20 = vpack.c.bf16 %v1250_v19, %v1250_v19  ;;  %v2270_v22 = vpop.f32.mrb[21].mxu0 }
 0x729   : > { %v1253_v23 = vpop.f32.mrb[22].mxu0 }
 0x72a   : > { %1260 = vrot.lane.b32.xlu1 %v2154_v20, %s3047_s25  ;;  %v2271_v21 = vpop.f32.mrb[23].mxu0  ;;  %s3051_s25 = smov [#allocation23]  }
 0x72f   : > { %v1370_v24 = vpop.f32.mrb[24].mxu0 }
 0x730   : > { %v2155_v25 = vpack.c.bf16 %v1370_v24, %v1370_v24  ;;  %v2282_v26 = vpop.f32.mrb[25].mxu0 }
 0x731   : > { %v1373_v27 = vpop.f32.mrb[26].mxu0 }
 0x732   : > { %1380 = vrot.lane.b32.xlu0 %v2155_v25, %s3048_s28  ;;  %v2283_v28 = vpop.f32.mrb[27].mxu0  ;;  %s2917_s28 = sshll.u32 %s3051_s25, 4  ;;  %s2918_s28 = int_to_ptr.vmem [resolvable:$false] %s2917_s28 }
 0x733   : > { %p2920_p12 = scmp.lt.s32.totalorder %s3709_s15, %s2918_s28 }
 0x737   : > { %v1490_v30 = vpop.f32.mrb[28].mxu0 }
 0x738   : > { %v2156_v32 = vpack.c.bf16 %v1490_v30, %v1490_v30  ;;  %v2294_v33 = vpop.f32.mrb[29].mxu0  ;;  %v2141_v30 = vld [vmem:[#allocation21] ss:$0 sm:$0xff] }
 0x739   : > { %v1493_v34 = vpop.f32.mrb[30].mxu0 }
 0x73a   : > { %1500 = vrot.lane.b32.xlu1 %v2156_v32, %s3049_s14  ;;  %v2295_v35 = vpop.f32.mrb[31].mxu0  ;;  %s2919_s14 = scalar_lea.vmem %s2918_s28, 256 }
 0x73b   : > { %p2921_p8 = scmp.lt.s32.totalorder %s2919_s14, %s2913_s20 }
 0x73d   : > { %p2922_p5 = por %p2921_p8, %p2920_p12 }
 0x73f   : > { %v1610_v36 = vpop.f32.mrb[32].mxu0  ;;  %p2923_p9 = pnand %p2922_p5, %p2916_p11 }
 0x740   : > { %v2157_v37 = vpack.c.bf16 %v1610_v36, %v1610_v36  ;;  %v2306_v38 = vpop.f32.mrb[33].mxu0 }
 0x741   : > { %v1613_v39 = vpop.f32.mrb[34].mxu0 }
 0x742   : > { %1620 = vrot.lane.b32.xlu0 %v2157_v37, %s3050_s19  ;;  %v2307_v40 = vpop.f32.mrb[35].mxu0 }
 0x74e   : > { %v901_v41 = vpop.permute.xlu1 %900 }
 0x74f   : > { %904 = vst.msk [vmem:[#allocation2] sm:$0xf] %vm903_vm6, %v901_v41 }
 0x756   : > { %v1021_v42 = vpop.permute.xlu1 %1020 }
 0x757   : > { %1024 = vst.msk [vmem:[#allocation2] sm:$0xf] %vm1023_vm7, %v1021_v42 }
 0x783   : > { %v1141_v43 = vpop.permute.xlu0 %1140 }
 0x784   : > { %1144 = vst.msk [vmem:[#allocation2] sm:$0xf] %vm1143_vm8, %v1141_v43 }
 0x79c   : > { %v1261_v44 = vpop.permute.xlu1 %1260 }
 0x79d   : > { %1264 = vst.msk [vmem:[#allocation2] sm:$0xf] %vm1263_vm9, %v1261_v44 }
 0x7a4   : > { %v1381_v45 = vpop.permute.xlu0 %1380 }
 0x7a5   : > { %1384 = vst.msk [vmem:[#allocation2] sm:$0xf] %vm1383_vm10, %v1381_v45 }
 0x7ac   : > { %v1501_v46 = vpop.permute.xlu1 %1500 }
 0x7ad   : > { %1504 = vst.msk [vmem:[#allocation2] sm:$0xf] %vm1503_vm11, %v1501_v46 }
 0x7b4   : > { %v1621_v47 = vpop.permute.xlu0 %1620 }
 0x7b5   : > { %1624 = vst.msk [vmem:[#allocation2] sm:$0xf] %vm1623_vm12, %v1621_v47 }
 0x7bc   : > { %v1625_v48 = vld [vmem:[#allocation2] sm:$0xf] }
 0x7bd   : > { %2313 = vmatmul.mubr.msk.bf16.vlgmr.msra.gmra.mrb[32].mxu1 %vm579_vm0, %v1625_v48 }
 0x7be   : > { %2332 = vmatprep.mubr.msk.bf16.mxu1 %vm3020_vm1, %v3019_v8  ;;  %2325 = vmatpush3.bf16.msra.mxu1 %v2533_v11 }
 0x7bf   : > { %2326 = vmatprep.subr.bf16.mxu1 %v3019_v8 }
 0x7c2   : > { %2327 = vmatpush3.bf16.msra.mxu1 %v2534_v12 }
 0x7c3   : > { %2328 = vmatprep.subr.bf16.mxu1 %v3019_v8 }
 0x7c6   : > { %2329 = vmatpush3.bf16.msra.mxu1 %v2535_v13 }
 0x7c7   : > { %2330 = vmatprep.subr.bf16.mxu1 %v3019_v8 }
 0x7ca   : > { %2331 = vmatpush3.bf16.msra.mxu1 %v2536_v14 }
 0x890   : > { %v1686_v50 = vpop.f32.mrb[32].mxu1 }
 0x891   : > { %v1687_v51 = vadd.f32 %v2131_v49, %v1686_v50  ;;  %v2314_v52 = vpop.f32.mrb[33].mxu1 }
 0x892   : > { %v1689_v53 = vpop.f32.mrb[34].mxu1 }
 0x893   : > { %v2315_v54 = vpop.f32.mrb[35].mxu1  ;;  %v1692_v55 = vadd.f32 %v1687_v51, %v3501_v0 }
 0x895   : > { %v1695_v56 = vsel %vm579_vm0, %v1692_v55, 0.0 }
 0x896   : > { %1696 = vadd.xlane.f32.xlu1 %v1695_v56 }
 0x923   : > { %v1697_v57 = vpop.xlane.xlu1 %1696 }
 0x924   : > { %v1698_v58 = vmul.f32 0.03125, %v1697_v57 }
 0x926   : > { %v1699_v59 = vsub.f32 %v1692_v55, %v1698_v58 }
 0x928   : > { %v1700_v60 = vmul.f32 %v1699_v59, %v1699_v59 }
 0x92a   : > { %v1701_v61 = vsel %vm579_vm0, %v1700_v60, 0.0 }
 0x92b   : > { %1702 = vadd.xlane.f32.xlu0 %v1701_v61 }
 0x9b8   : > { %v1703_v1 = vpop.xlane.xlu0 %1702 }
 0x9b9   : > { %v1704_v2 = vmul.f32 0.03125, %v1703_v1 }
 0x9bb   : > { %v1705_v3 = vadd.f32 1e-05, %v1704_v2 }
 0x9bd   : > { %2571 = vrsqrt.f32 %v1705_v3 }
 0x9c7   : > { %v2572_v0 = vpop.eup %2571 }
 0x9c8   : > { %v1707_v5 = vmul.f32 %v2572_v0, %v1699_v59 }
 0x9ca   : > { %v1714_v7 = vmul.f32 %v2135_v4, %v1707_v5 }
 0x9cc   : > { %v1721_v9 = vadd.f32 %v2136_v6, %v1714_v7 }
 0x9ce   : > { %v1722_v10 = vpack.c.bf16 %v1721_v9, %v1721_v9 }
 0x9d0   : > { %2321 = vmatmul.mubr.msk.bf16.vlgmr.msra.gmra.mrb[36].mxu0 %vm579_vm0, %v1722_v10 }
 0xaa3   : > { %v1783_v16 = vpop.f32.mrb[36].mxu0 }
 0xaa4   : > { %v1784_v17 = vadd.f32 %v2137_v15, %v1783_v16  ;;  %v2322_v18 = vpop.f32.mrb[37].mxu0 }
 0xaa5   : > { %v1786_v19 = vpop.f32.mrb[38].mxu0 }
 0xaa6   : > { %v1790_v20 = vmul.f32 0.044715, %v1784_v17  ;;  %v2323_v22 = vpop.f32.mrb[39].mxu0  ;;  %v1789_v27 = vmul.f32 0.5, %v1784_v17 }
 0xaa8   : > { %v1791_v23 = vmul.f32 %v1790_v20, %v1784_v17 }
 0xaaa   : > { %v1792_v21 = vmul.f32 %v1791_v23, %v1784_v17 }
 0xaac   : > { %v1793_v24 = vadd.f32 %v1792_v21, %v1784_v17 }
 0xaae   : > { %v1794_v25 = vmul.f32 0.7978846, %v1793_v24 }
 0xab0   : > { %2573 = vtanh.f32 %v1794_v25 }
 0xaba   : > { %v2574_v26 = vpop.eup %2573 }
 0xabb   : > { %v1796_v28 = vadd.f32 1.0, %v2574_v26 }
 0xabd   : > { %v1797_v29 = vmul.f32 %v1796_v28, %v1789_v27 }
 0xabf   : > { %v1798_v8 = vpack.c.bf16 %v1797_v29, %v1797_v29 }
 0xac1   : > { %2333 = vmatmul.mubr.msk.bf16.vlgmr.msra.gmra.mrb[36].mxu1 %vm1838_vm13, %v1798_v8 }
 0xb94   : > { %v1876_v31 = vpop.f32.mrb[36].mxu1 }
 0xb95   : > { %v1877_v32 = vadd.f32 %v2141_v30, %v1876_v31  ;;  %v2334_v33 = vpop.f32.mrb[37].mxu1 }
 0xb96   : > { %v1879_v34 = vpop.f32.mrb[38].mxu1 }
 0xb97   : > { %v1882_v35 = vadd.f32 %v1877_v32, %v1721_v9  ;;  %v2335_v36 = vpop.f32.mrb[39].mxu1 }
 0xb99   : > { %1883 = vst.msk [vmem:[%s574_s17] sm:$0xff] %vm579_vm0, %v1882_v35 }
 0xb9a   : > { %2926 = shalt.err (!%p2923_p9)
}
 0xb9b   : > { %s2927_s16 = scalar_lea.hbm %s3707_s26, 128  ;;  %s2931_s17 = scalar_lea.hbm %s3806_s12, 256 }
 0xb9c   : > { %p2928_p7 = scmp.ne.s32.totalorder %s3707_s26, %s2927_s16  ;;  %p2932_p13 = scmp.lt.u32.totalorder %s3707_s26, %s3806_s12 }
 0xb9d   : > { %p2933_p1 = scmp.lt.u32.totalorder %s2931_s17, %s2927_s16  ;;  %p2935_p2 = scmp.lt.u32.totalorder %s2927_s16, %s3707_s26 }
 0xb9e   : > { %p2929_p10 = pnand %p2928_p7, %p3807_p0 }
 0xb9f   : > { %p2934_p3 = por %p2933_p1, %p2932_p13 }
 0xba0   : > { %p2930_p4 = pneg %p2929_p10 }
 0xba1   : > { %p2936_p6 = por %p2935_p2, %p2934_p3 }
 0xba3   : > { %p2937_p11 = pnand %p2936_p6, %p2930_p4 }
 0xba5   : > { %2940 = shalt.err (!%p2937_p11)
}
 0xba6   : > { %2382 = dma.vmem_to_hbm [thread:$0]  (%p3807_p0), %s3709_s15, 128, %s3707_s26, %s1885_s27  }
 0xba7 PF: > { %s1910_s20 = sand.u32 1, %s2991_s21   ;;  %p3808_p12 = scmp.ne.s32.totalorder %s3790_s29, 0 }
 0xba8   : > { %p3809_p8 = scmp.ge.s32.totalorder %s3003_s24, 2  ;;  %s1911_s25 = scalar_lea.sflag [#allocation5], %s1910_s20 }
 0xbaa   : > { %p2423_p5 = pnand %p3809_p8, %p3808_p12 }
 0xbac   : > { %2986 = dma.done.wait (!%p2423_p5), %s1911_s25, 128  }
 0xbad   : > { %2988 = vsyncadd (!%p2423_p5), %s1911_s25, 4294967168  ;;  %p31_p9 = scmp.ge.s32.totalorder %s3397_s13, 4   ;;  %s3810_s21 = smov %s2995_s22 }
 0xbae   : > { %s3811_s22 = smov %s2999_s23  ;;  %s3812_s23 = smov %s3409_s2 }
 0xbaf   : > { %s3813_s24 = smov %s3397_s13  ;;  %33 = sbr.rel (!%p31_p9) target bundleno = 16 (0x10), region = 157 }
 0xbb6   :  { %1916 = vsyncpa [#allocation4], 1 }
 0xbb7   :  { %1918 = vsyncpa [#allocation4 + $0x1], 1 }
 0xbb8   :  { %1919 = vsyncpa [#allocation7], 1 }
 0xbb9   :  { %1920 = vsyncpa [#allocation10], 1 }
 0xbba   :  { %1921 = vsyncpa [#allocation13], 1 }
 0xbbb   :  { %1922 = vsyncpa [#allocation16], 1 }
 0xbbc   :  { %1923 = vsyncpa [#allocation19], 1 }
 0xbbd   :  { %1924 = vsyncpa [#allocation22], 1 }
 0xbbe   :  { %1925 = vsyncpa [#allocation5], 1 }
 0xbbf   :  { %1927 = vsyncpa [#allocation5 + $0x1], 1 }

</bundles_post_ra>
